<compile_context>
chip_gen: v5e
topology: v5e:2x2
jax: 0.10.0
libtpu: 0.0.40
codegen_flags: <defaults>
</compile_context>

<pallas_src>
import functools
import math

import jax
import jax.numpy as jnp
from jax.experimental import pallas as pl
from jax.experimental.pallas import tpu as pltpu

# ----- model dimensions (small, consistent with a transformer encoder) -----
B, S, D = 2, 8, 32          # batch, sequence length, model dim (layer.size)
H = 4                       # attention heads
DH = D // H                 # per-head dim
DFF = 64                    # feed-forward hidden dim
EPS = 1e-6                  # LayerNorm eps (matches reference)


# ------------------------------ fused kernel ------------------------------

def _encoder_layer_kernel(
    x_ref, mask_ref,
    ln_a_ref, ln_b_ref,
    wqkv_ref, bqkv_ref,
    wo_ref, bo_ref,
    w1_ref, b1_ref,
    w2_ref, b2_ref,
    o_ref, att_ref,
    *, batch, seq, n_heads, d_head, scale, eps):
  xf = x_ref[...]                   # (B*S, D) — batch flattened in wrapper
  a = ln_a_ref[...]                 # (1, D)
  b = ln_b_ref[...]                 # (1, D)
  d_model = xf.shape[-1]

  def layer_norm(t):
    # Reference LayerNorm: torch .std() is unbiased (divide by d-1),
    # eps added to the std (NOT the variance).
    mean = jnp.mean(t, axis=-1, keepdims=True)
    diff = t - mean
    var = jnp.sum(diff * diff, axis=-1, keepdims=True) / (d_model - 1)
    return a * diff / (jnp.sqrt(var) + eps) + b

  # ---- sublayer 1: self-attention (pre-norm) ----
  normed = layer_norm(xf)
  qkv = (jnp.dot(normed, wqkv_ref[...], preferred_element_type=jnp.float32)
         + bqkv_ref[...])                                        # (B*S, 3D)
  q = qkv[:, :d_model]
  k = qkv[:, d_model:2 * d_model]
  v = qkv[:, 2 * d_model:]

  ctx_rows = []
  for bb in range(batch):                                        # unrolled, B=2
    m_b = mask_ref[bb]                                           # (1, S)
    r0 = bb * seq
    head_ctx = []
    for hh in range(n_heads):                                    # unrolled, H=4
      c0 = hh * d_head
      q_h = q[r0:r0 + seq, c0:c0 + d_head]                       # (S, Dh)
      k_h = k[r0:r0 + seq, c0:c0 + d_head]                       # (S, Dh)
      v_h = v[r0:r0 + seq, c0:c0 + d_head]                       # (S, Dh)
      s = jnp.dot(q_h, k_h.T, preferred_element_type=jnp.float32) * scale
      s = jnp.where(m_b == 0.0, -1e9, s)        # masked_fill(mask == 0, -1e9)
      s_max = jnp.max(s, axis=-1, keepdims=True)
      e = jnp.exp(s - s_max)
      # softmax denominator on the EUP slot (approx reciprocal is ~free).
      p = e * pl.reciprocal(jnp.sum(e, axis=-1, keepdims=True), approx=True)
      att_ref[bb, hh] = p
      head_ctx.append(jnp.dot(p, v_h, preferred_element_type=jnp.float32))
    ctx_rows.append(jnp.concatenate(head_ctx, axis=-1))          # (S, D)
  ctx = jnp.concatenate(ctx_rows, axis=0)                        # (B*S, D)

  attn_out = (jnp.dot(ctx, wo_ref[...], preferred_element_type=jnp.float32)
              + bo_ref[...])
  x1 = xf + attn_out                                             # residual 1

  # ---- sublayer 2: feed-forward (pre-norm, SAME LayerNorm params) ----
  normed2 = layer_norm(x1)
  h1 = jnp.maximum(
      jnp.dot(normed2, w1_ref[...], preferred_element_type=jnp.float32)
      + b1_ref[...], 0.0)                                        # ReLU
  ffn = (jnp.dot(h1, w2_ref[...], preferred_element_type=jnp.float32)
         + b2_ref[...])
  o_ref[...] = x1 + ffn                                          # residual 2


# ------------------------------ wrapper ------------------------------

def encoder_layer(x, mask, params):
  Bx, Sx, Dx = x.shape
  dff = params["w1"].shape[1]

  kernel = functools.partial(
      _encoder_layer_kernel, batch=Bx, seq=Sx, n_heads=H, d_head=DH,
      scale=1.0 / math.sqrt(DH), eps=EPS)

  def full(shape):
    # Whole-array block; single grid step, everything resident in VMEM.
    return pl.BlockSpec(shape, lambda i, _n=len(shape): (0,) * _n)

  out2d, att = pl.pallas_call(
      kernel,
      out_shape=(
          jax.ShapeDtypeStruct((Bx * Sx, Dx), jnp.float32),
          jax.ShapeDtypeStruct((Bx, H, Sx, Sx), jnp.float32),
      ),
      grid=(1,),
      in_specs=[
          full((Bx * Sx, Dx)),                                   # x (flattened)
          full((Bx, 1, Sx)),                                     # mask
          full((1, Dx)), full((1, Dx)),                          # ln a, b
          full((Dx, 3 * Dx)), full((1, 3 * Dx)),                 # fused QKV
          full((Dx, Dx)), full((1, Dx)),                         # out proj
          full((Dx, dff)), full((1, dff)),                       # ffn w1
          full((dff, Dx)), full((1, Dx)),                        # ffn w2
      ],
      out_specs=(
          full((Bx * Sx, Dx)),
          full((Bx, H, Sx, Sx)),
      ),
      compiler_params=pltpu.CompilerParams(
          dimension_semantics=("arbitrary",)),
  )(
      x.reshape(Bx * Sx, Dx), mask,
      params["ln_a"].reshape(1, Dx), params["ln_b"].reshape(1, Dx),
      params["wqkv"], params["bqkv"].reshape(1, 3 * Dx),
      params["wo"], params["bo"].reshape(1, Dx),
      params["w1"], params["b1"].reshape(1, dff),
      params["w2"], params["b2"].reshape(1, Dx),
  )
  return out2d.reshape(Bx, Sx, Dx), att


# ------------------------------ parameters ------------------------------

def init_params(key):
  def dense(k, fan_in, fan_out):
    kw, _ = jax.random.split(k)
    w = jax.random.normal(kw, (fan_in, fan_out), jnp.float32) * 0.02
    b = jnp.zeros((fan_out,), jnp.float32)
    return w, b

  ks = jax.random.split(key, 8)
  wq, bq = dense(ks[0], D, D)
  wk, bk = dense(ks[1], D, D)
  wv, bv = dense(ks[2], D, D)
  wo, bo = dense(ks[3], D, D)
  w1, b1 = dense(ks[4], D, DFF)
  w2, b2 = dense(ks[5], DFF, D)
  return dict(
      # QKV fused once at init: one MXU pass for all three projections.
      wqkv=jnp.concatenate([wq, wk, wv], axis=1),
      bqkv=jnp.concatenate([bq, bk, bv], axis=0),
      wo=wo, bo=bo, w1=w1, b1=b1, w2=w2, b2=b2,
      # EncoderLayer has ONE shared LayerNorm used before both sublayers.
      ln_a=1.0 + 0.1 * jax.random.normal(ks[6], (D,), jnp.float32),
      ln_b=0.1 * jax.random.normal(ks[7], (D,), jnp.float32),
  )


# ------------------------------ pure-JAX reference ------------------------------

def _reference(x, mask, p):
  def ln(t):
    mean = jnp.mean(t, axis=-1, keepdims=True)
    diff = t - mean
    std = jnp.sqrt(jnp.sum(diff * diff, axis=-1, keepdims=True) / (t.shape[-1] - 1))
    return p["ln_a"] * diff / (std + EPS) + p["ln_b"]

  Bx, Sx, Dx = x.shape
  n = ln(x)
  qkv = n @ p["wqkv"] + p["bqkv"]
  q, k, v = jnp.split(qkv, 3, axis=-1)

  def heads(t):
    return t.reshape(Bx, Sx, H, DH).transpose(0, 2, 1, 3)

  q, k, v = heads(q), heads(k), heads(v)
  sc = jnp.einsum("bhqd,bhkd->bhqk", q, k) / math.sqrt(DH)
  sc = jnp.where(mask[:, None, :, :] == 0.0, -1e9, sc)
  p_att = jax.nn.softmax(sc, axis=-1)
  ctx = jnp.einsum("bhqk,bhkd->bhqd", p_att, v).transpose(0, 2, 1, 3)
  ctx = ctx.reshape(Bx, Sx, Dx)
  x1 = x + ctx @ p["wo"] + p["bo"]
  n2 = ln(x1)
  x2 = x1 + jax.nn.relu(n2 @ p["w1"] + p["b1"]) @ p["w2"] + p["b2"]
  return x2, p_att


# ----------------------------------- main -----------------------------------

if __name__ == "__main__":
  key = jax.random.PRNGKey(0)
  kx, kp = jax.random.split(key)
  x = jax.random.normal(kx, (B, S, D), jnp.float32)
  # mask: (B, 1, S); 1 = attend, 0 = masked.  Mask out the last key of batch 1.
  mask = jnp.ones((B, 1, S), jnp.float32).at[1, 0, S - 1].set(0.0)
  params = init_params(kp)

  out, atten = jax.jit(encoder_layer)(x, mask, params)
  out = jax.block_until_ready(out)
  atten = jax.block_until_ready(atten)

  assert out.shape == (B, S, D)
  assert atten.shape == (B, H, S, S)

  # Numeric check vs pure-JAX reference (loose tol for approx EUP reciprocal).
  ref_out, ref_att = _reference(x, mask, params)
  assert jnp.allclose(out, ref_out, atol=2e-2, rtol=2e-2), \
      float(jnp.max(jnp.abs(out - ref_out)))
  assert jnp.allclose(atten, ref_att, atol=2e-2, rtol=2e-2), \
      float(jnp.max(jnp.abs(atten - ref_att)))

  print("KERNEL_OK")
</pallas_src>

<mosaic_0001>
module attributes {stable_mosaic.version = 11 : i64} {
  func.func @_encoder_layer_kernel(%arg0: i32, %arg1: memref<16x32xf32, #tpu.memory_space<vmem>>, %arg2: memref<2x1x8xf32, #tpu.memory_space<vmem>>, %arg3: memref<1x32xf32, #tpu.memory_space<vmem>>, %arg4: memref<1x32xf32, #tpu.memory_space<vmem>>, %arg5: memref<32x96xf32, #tpu.memory_space<vmem>>, %arg6: memref<1x96xf32, #tpu.memory_space<vmem>>, %arg7: memref<32x32xf32, #tpu.memory_space<vmem>>, %arg8: memref<1x32xf32, #tpu.memory_space<vmem>>, %arg9: memref<32x64xf32, #tpu.memory_space<vmem>>, %arg10: memref<1x64xf32, #tpu.memory_space<vmem>>, %arg11: memref<64x32xf32, #tpu.memory_space<vmem>>, %arg12: memref<1x32xf32, #tpu.memory_space<vmem>>, %arg13: memref<16x32xf32, #tpu.memory_space<vmem>>, %arg14: memref<2x4x8x8xf32, #tpu.memory_space<vmem>>) attributes {dimension_semantics = [#tpu.dimension_semantics<arbitrary>], iteration_bounds = array<i64: 1>, scalar_prefetch = 0 : i64, scratch_operands = 0 : i64, tpu.core_type = #tpu.core_type<tc>, window_params = [{pipeline_mode = #tpu.pipeline_mode<synchronous>, transform_indices = @transform_0, window_bounds = array<i64: 16, 32>}, {pipeline_mode = #tpu.pipeline_mode<synchronous>, transform_indices = @transform_1, window_bounds = array<i64: 2, 1, 8>}, {pipeline_mode = #tpu.pipeline_mode<synchronous>, transform_indices = @transform_2, window_bounds = array<i64: 1, 32>}, {pipeline_mode = #tpu.pipeline_mode<synchronous>, transform_indices = @transform_3, window_bounds = array<i64: 1, 32>}, {pipeline_mode = #tpu.pipeline_mode<synchronous>, transform_indices = @transform_4, window_bounds = array<i64: 32, 96>}, {pipeline_mode = #tpu.pipeline_mode<synchronous>, transform_indices = @transform_5, window_bounds = array<i64: 1, 96>}, {pipeline_mode = #tpu.pipeline_mode<synchronous>, transform_indices = @transform_6, window_bounds = array<i64: 32, 32>}, {pipeline_mode = #tpu.pipeline_mode<synchronous>, transform_indices = @transform_7, window_bounds = array<i64: 1, 32>}, {pipeline_mode = #tpu.pipeline_mode<synchronous>, transform_indices = @transform_8, window_bounds = array<i64: 32, 64>}, {pipeline_mode = #tpu.pipeline_mode<synchronous>, transform_indices = @transform_9, window_bounds = array<i64: 1, 64>}, {pipeline_mode = #tpu.pipeline_mode<synchronous>, transform_indices = @transform_10, window_bounds = array<i64: 64, 32>}, {pipeline_mode = #tpu.pipeline_mode<synchronous>, transform_indices = @transform_11, window_bounds = array<i64: 1, 32>}, {pipeline_mode = #tpu.pipeline_mode<synchronous>, transform_indices = @transform_12, window_bounds = array<i64: 16, 32>}, {pipeline_mode = #tpu.pipeline_mode<synchronous>, transform_indices = @transform_13, window_bounds = array<i64: 2, 4, 8, 8>}]} {
    %c0 = arith.constant 0 : index
    %c0_0 = arith.constant 0 : index
    %0 = vector.load %arg1[%c0, %c0_0] : memref<16x32xf32, #tpu.memory_space<vmem>>, vector<16x32xf32>
    %c0_1 = arith.constant 0 : index
    %c0_2 = arith.constant 0 : index
    %1 = vector.load %arg3[%c0_1, %c0_2] : memref<1x32xf32, #tpu.memory_space<vmem>>, vector<1x32xf32>
    %c0_3 = arith.constant 0 : index
    %c0_4 = arith.constant 0 : index
    %2 = vector.load %arg4[%c0_3, %c0_4] : memref<1x32xf32, #tpu.memory_space<vmem>>, vector<1x32xf32>
    %cst = arith.constant dense<0.000000e+00> : vector<16xf32>
    %3 = vector.multi_reduction <add>, %0, %cst [1] : vector<16x32xf32> to vector<16xf32>
    %4 = vector.shape_cast %3 : vector<16xf32> to vector<16x1xf32>
    %cst_5 = arith.constant 3.200000e+01 : f32
    %5 = vector.broadcast %cst_5 : f32 to vector<16x1xf32>
    %6 = arith.divf %4, %5 : vector<16x1xf32>
    %7 = vector.broadcast %6 : vector<16x1xf32> to vector<16x32xf32>
    %8 = arith.subf %0, %7 : vector<16x32xf32>
    %9 = arith.mulf %8, %8 : vector<16x32xf32>
    %cst_6 = arith.constant dense<0.000000e+00> : vector<16xf32>
    %10 = vector.multi_reduction <add>, %9, %cst_6 [1] : vector<16x32xf32> to vector<16xf32>
    %11 = vector.shape_cast %10 : vector<16xf32> to vector<16x1xf32>
    %cst_7 = arith.constant 3.100000e+01 : f32
    %12 = vector.broadcast %cst_7 : f32 to vector<16x1xf32>
    %13 = arith.divf %11, %12 : vector<16x1xf32>
    %14 = vector.broadcast %1 : vector<1x32xf32> to vector<16x32xf32>
    %15 = arith.mulf %14, %8 : vector<16x32xf32>
    %16 = math.sqrt %13 : vector<16x1xf32>
    %cst_8 = arith.constant 9.99999997E-7 : f32
    %17 = vector.broadcast %cst_8 : f32 to vector<16x1xf32>
    %18 = arith.addf %16, %17 : vector<16x1xf32>
    %19 = vector.broadcast %18 : vector<16x1xf32> to vector<16x32xf32>
    %20 = arith.divf %15, %19 : vector<16x32xf32>
    %21 = vector.broadcast %2 : vector<1x32xf32> to vector<16x32xf32>
    %22 = arith.addf %20, %21 : vector<16x32xf32>
    %c0_9 = arith.constant 0 : index
    %c0_10 = arith.constant 0 : index
    %23 = vector.load %arg5[%c0_9, %c0_10] : memref<32x96xf32, #tpu.memory_space<vmem>>, vector<32x96xf32>
    %cst_11 = arith.constant dense<0.000000e+00> : vector<16x96xf32>
    %24 = tpu.matmul %22, %23, %cst_11 {dimension_numbers = #tpu.dot_dimension_numbers<[1], [0], [0], [1], [0, 0, 1, 1], [], []>} : vector<16x32xf32>, vector<32x96xf32>, vector<16x96xf32> -> vector<16x96xf32>
    %c0_12 = arith.constant 0 : index
    %c0_13 = arith.constant 0 : index
    %25 = vector.load %arg6[%c0_12, %c0_13] : memref<1x96xf32, #tpu.memory_space<vmem>>, vector<1x96xf32>
    %26 = vector.broadcast %25 : vector<1x96xf32> to vector<16x96xf32>
    %27 = arith.addf %24, %26 : vector<16x96xf32>
    %28 = vector.extract_strided_slice %27 {offsets = [0, 0], sizes = [16, 32], strides = [1, 1]} : vector<16x96xf32> to vector<16x32xf32>
    %29 = vector.extract_strided_slice %27 {offsets = [0, 32], sizes = [16, 32], strides = [1, 1]} : vector<16x96xf32> to vector<16x32xf32>
    %30 = vector.extract_strided_slice %27 {offsets = [0, 64], sizes = [16, 32], strides = [1, 1]} : vector<16x96xf32> to vector<16x32xf32>
    %c0_14 = arith.constant 0 : index
    %c0_15 = arith.constant 0 : index
    %c0_16 = arith.constant 0 : index
    %31 = vector.load %arg2[%c0_14, %c0_15, %c0_16] : memref<2x1x8xf32, #tpu.memory_space<vmem>>, vector<1x1x8xf32>
    %32 = vector.shape_cast %31 : vector<1x1x8xf32> to vector<1x8xf32>
    %33 = vector.extract_strided_slice %28 {offsets = [0, 0], sizes = [8, 8], strides = [1, 1]} : vector<16x32xf32> to vector<8x8xf32>
    %34 = vector.extract_strided_slice %29 {offsets = [0, 0], sizes = [8, 8], strides = [1, 1]} : vector<16x32xf32> to vector<8x8xf32>
    %35 = vector.extract_strided_slice %30 {offsets = [0, 0], sizes = [8, 8], strides = [1, 1]} : vector<16x32xf32> to vector<8x8xf32>
    %36 = tpu.transpose %34, [1, 0] : vector<8x8xf32> -> vector<8x8xf32>
    %cst_17 = arith.constant dense<0.000000e+00> : vector<8x8xf32>
    %37 = tpu.matmul %33, %36, %cst_17 {dimension_numbers = #tpu.dot_dimension_numbers<[1], [0], [0], [1], [0, 0, 1, 1], [], []>} : vector<8x8xf32>, vector<8x8xf32>, vector<8x8xf32> -> vector<8x8xf32>
    %cst_18 = arith.constant 0.353553385 : f32
    %38 = vector.broadcast %cst_18 : f32 to vector<8x8xf32>
    %39 = arith.mulf %37, %38 : vector<8x8xf32>
    %cst_19 = arith.constant 0.000000e+00 : f32
    %40 = vector.broadcast %cst_19 : f32 to vector<1x8xf32>
    %41 = arith.cmpf oeq, %32, %40 : vector<1x8xf32>
    %cst_20 = arith.constant -1.000000e+09 : f32
    %42 = vector.shape_cast %41 : vector<1x8xi1> to vector<1x8xi1>
    %43 = vector.broadcast %42 : vector<1x8xi1> to vector<8x8xi1>
    %44 = vector.broadcast %cst_20 : f32 to vector<8x8xf32>
    %45 = arith.select %43, %44, %39 : vector<8x8xi1>, vector<8x8xf32>
    %cst_21 = arith.constant dense<0xFF800000> : vector<8xf32>
    %46 = vector.multi_reduction <maximumf>, %45, %cst_21 [1] : vector<8x8xf32> to vector<8xf32>
    %47 = vector.shape_cast %46 : vector<8xf32> to vector<8x1xf32>
    %48 = vector.broadcast %47 : vector<8x1xf32> to vector<8x8xf32>
    %49 = arith.subf %45, %48 : vector<8x8xf32>
    %50 = math.exp %49 : vector<8x8xf32>
    %cst_22 = arith.constant dense<0.000000e+00> : vector<8xf32>
    %51 = vector.multi_reduction <add>, %50, %cst_22 [1] : vector<8x8xf32> to vector<8xf32>
    %52 = vector.shape_cast %51 : vector<8xf32> to vector<8x1xf32>
    %53 = tpu.reciprocal %52 {approx = true} : vector<8x1xf32> -> vector<8x1xf32>
    %54 = vector.broadcast %53 : vector<8x1xf32> to vector<8x8xf32>
    %55 = arith.mulf %50, %54 : vector<8x8xf32>
    %c0_23 = arith.constant 0 : index
    %c0_24 = arith.constant 0 : index
    %c0_25 = arith.constant 0 : index
    %c0_26 = arith.constant 0 : index
    %56 = vector.load %arg14[%c0_23, %c0_24, %c0_25, %c0_26] : memref<2x4x8x8xf32, #tpu.memory_space<vmem>>, vector<1x1x8x8xf32>
    %57 = vector.shape_cast %56 : vector<1x1x8x8xf32> to vector<8x8xf32>
    %58 = vector.shape_cast %55 : vector<8x8xf32> to vector<1x1x8x8xf32>
    tpu.vector_store %arg14[%c0_23, %c0_24, %c0_25, %c0_26], %58 {strides = array<i32>} : memref<2x4x8x8xf32, #tpu.memory_space<vmem>>, vector<1x1x8x8xf32>,
    %cst_27 = arith.constant dense<0.000000e+00> : vector<8x8xf32>
    %59 = tpu.matmul %55, %35, %cst_27 {dimension_numbers = #tpu.dot_dimension_numbers<[1], [0], [0], [1], [0, 0, 1, 1], [], []>} : vector<8x8xf32>, vector<8x8xf32>, vector<8x8xf32> -> vector<8x8xf32>
    %60 = vector.extract_strided_slice %28 {offsets = [0, 8], sizes = [8, 8], strides = [1, 1]} : vector<16x32xf32> to vector<8x8xf32>
    %61 = vector.extract_strided_slice %29 {offsets = [0, 8], sizes = [8, 8], strides = [1, 1]} : vector<16x32xf32> to vector<8x8xf32>
    %62 = vector.extract_strided_slice %30 {offsets = [0, 8], sizes = [8, 8], strides = [1, 1]} : vector<16x32xf32> to vector<8x8xf32>
    %63 = tpu.transpose %61, [1, 0] : vector<8x8xf32> -> vector<8x8xf32>
    %cst_28 = arith.constant dense<0.000000e+00> : vector<8x8xf32>
    %64 = tpu.matmul %60, %63, %cst_28 {dimension_numbers = #tpu.dot_dimension_numbers<[1], [0], [0], [1], [0, 0, 1, 1], [], []>} : vector<8x8xf32>, vector<8x8xf32>, vector<8x8xf32> -> vector<8x8xf32>
    %cst_29 = arith.constant 0.353553385 : f32
    %65 = vector.broadcast %cst_29 : f32 to vector<8x8xf32>
    %66 = arith.mulf %64, %65 : vector<8x8xf32>
    %cst_30 = arith.constant 0.000000e+00 : f32
    %67 = vector.broadcast %cst_30 : f32 to vector<1x8xf32>
    %68 = arith.cmpf oeq, %32, %67 : vector<1x8xf32>
    %cst_31 = arith.constant -1.000000e+09 : f32
    %69 = vector.shape_cast %68 : vector<1x8xi1> to vector<1x8xi1>
    %70 = vector.broadcast %69 : vector<1x8xi1> to vector<8x8xi1>
    %71 = vector.broadcast %cst_31 : f32 to vector<8x8xf32>
    %72 = arith.select %70, %71, %66 : vector<8x8xi1>, vector<8x8xf32>
    %cst_32 = arith.constant dense<0xFF800000> : vector<8xf32>
    %73 = vector.multi_reduction <maximumf>, %72, %cst_32 [1] : vector<8x8xf32> to vector<8xf32>
    %74 = vector.shape_cast %73 : vector<8xf32> to vector<8x1xf32>
    %75 = vector.broadcast %74 : vector<8x1xf32> to vector<8x8xf32>
    %76 = arith.subf %72, %75 : vector<8x8xf32>
    %77 = math.exp %76 : vector<8x8xf32>
    %cst_33 = arith.constant dense<0.000000e+00> : vector<8xf32>
    %78 = vector.multi_reduction <add>, %77, %cst_33 [1] : vector<8x8xf32> to vector<8xf32>
    %79 = vector.shape_cast %78 : vector<8xf32> to vector<8x1xf32>
    %80 = tpu.reciprocal %79 {approx = true} : vector<8x1xf32> -> vector<8x1xf32>
    %81 = vector.broadcast %80 : vector<8x1xf32> to vector<8x8xf32>
    %82 = arith.mulf %77, %81 : vector<8x8xf32>
    %c0_34 = arith.constant 0 : index
    %c1 = arith.constant 1 : index
    %c0_35 = arith.constant 0 : index
    %c0_36 = arith.constant 0 : index
    %83 = vector.load %arg14[%c0_34, %c1, %c0_35, %c0_36] : memref<2x4x8x8xf32, #tpu.memory_space<vmem>>, vector<1x1x8x8xf32>
    %84 = vector.shape_cast %83 : vector<1x1x8x8xf32> to vector<8x8xf32>
    %85 = vector.shape_cast %82 : vector<8x8xf32> to vector<1x1x8x8xf32>
    tpu.vector_store %arg14[%c0_34, %c1, %c0_35, %c0_36], %85 {strides = array<i32>} : memref<2x4x8x8xf32, #tpu.memory_space<vmem>>, vector<1x1x8x8xf32>,
    %cst_37 = arith.constant dense<0.000000e+00> : vector<8x8xf32>
    %86 = tpu.matmul %82, %62, %cst_37 {dimension_numbers = #tpu.dot_dimension_numbers<[1], [0], [0], [1], [0, 0, 1, 1], [], []>} : vector<8x8xf32>, vector<8x8xf32>, vector<8x8xf32> -> vector<8x8xf32>
    %87 = vector.extract_strided_slice %28 {offsets = [0, 16], sizes = [8, 8], strides = [1, 1]} : vector<16x32xf32> to vector<8x8xf32>
    %88 = vector.extract_strided_slice %29 {offsets = [0, 16], sizes = [8, 8], strides = [1, 1]} : vector<16x32xf32> to vector<8x8xf32>
    %89 = vector.extract_strided_slice %30 {offsets = [0, 16], sizes = [8, 8], strides = [1, 1]} : vector<16x32xf32> to vector<8x8xf32>
    %90 = tpu.transpose %88, [1, 0] : vector<8x8xf32> -> vector<8x8xf32>
    %cst_38 = arith.constant dense<0.000000e+00> : vector<8x8xf32>
    %91 = tpu.matmul %87, %90, %cst_38 {dimension_numbers = #tpu.dot_dimension_numbers<[1], [0], [0], [1], [0, 0, 1, 1], [], []>} : vector<8x8xf32>, vector<8x8xf32>, vector<8x8xf32> -> vector<8x8xf32>
    %cst_39 = arith.constant 0.353553385 : f32
    %92 = vector.broadcast %cst_39 : f32 to vector<8x8xf32>
    %93 = arith.mulf %91, %92 : vector<8x8xf32>
    %cst_40 = arith.constant 0.000000e+00 : f32
    %94 = vector.broadcast %cst_40 : f32 to vector<1x8xf32>
    %95 = arith.cmpf oeq, %32, %94 : vector<1x8xf32>
    %cst_41 = arith.constant -1.000000e+09 : f32
    %96 = vector.shape_cast %95 : vector<1x8xi1> to vector<1x8xi1>
    %97 = vector.broadcast %96 : vector<1x8xi1> to vector<8x8xi1>
    %98 = vector.broadcast %cst_41 : f32 to vector<8x8xf32>
    %99 = arith.select %97, %98, %93 : vector<8x8xi1>, vector<8x8xf32>
    %cst_42 = arith.constant dense<0xFF800000> : vector<8xf32>
    %100 = vector.multi_reduction <maximumf>, %99, %cst_42 [1] : vector<8x8xf32> to vector<8xf32>
    %101 = vector.shape_cast %100 : vector<8xf32> to vector<8x1xf32>
    %102 = vector.broadcast %101 : vector<8x1xf32> to vector<8x8xf32>
    %103 = arith.subf %99, %102 : vector<8x8xf32>
    %104 = math.exp %103 : vector<8x8xf32>
    %cst_43 = arith.constant dense<0.000000e+00> : vector<8xf32>
    %105 = vector.multi_reduction <add>, %104, %cst_43 [1] : vector<8x8xf32> to vector<8xf32>
    %106 = vector.shape_cast %105 : vector<8xf32> to vector<8x1xf32>
    %107 = tpu.reciprocal %106 {approx = true} : vector<8x1xf32> -> vector<8x1xf32>
    %108 = vector.broadcast %107 : vector<8x1xf32> to vector<8x8xf32>
    %109 = arith.mulf %104, %108 : vector<8x8xf32>
    %c0_44 = arith.constant 0 : index
    %c2 = arith.constant 2 : index
    %c0_45 = arith.constant 0 : index
    %c0_46 = arith.constant 0 : index
    %110 = vector.load %arg14[%c0_44, %c2, %c0_45, %c0_46] : memref<2x4x8x8xf32, #tpu.memory_space<vmem>>, vector<1x1x8x8xf32>
    %111 = vector.shape_cast %110 : vector<1x1x8x8xf32> to vector<8x8xf32>
    %112 = vector.shape_cast %109 : vector<8x8xf32> to vector<1x1x8x8xf32>
    tpu.vector_store %arg14[%c0_44, %c2, %c0_45, %c0_46], %112 {strides = array<i32>} : memref<2x4x8x8xf32, #tpu.memory_space<vmem>>, vector<1x1x8x8xf32>,
    %cst_47 = arith.constant dense<0.000000e+00> : vector<8x8xf32>
    %113 = tpu.matmul %109, %89, %cst_47 {dimension_numbers = #tpu.dot_dimension_numbers<[1], [0], [0], [1], [0, 0, 1, 1], [], []>} : vector<8x8xf32>, vector<8x8xf32>, vector<8x8xf32> -> vector<8x8xf32>
    %114 = vector.extract_strided_slice %28 {offsets = [0, 24], sizes = [8, 8], strides = [1, 1]} : vector<16x32xf32> to vector<8x8xf32>
    %115 = vector.extract_strided_slice %29 {offsets = [0, 24], sizes = [8, 8], strides = [1, 1]} : vector<16x32xf32> to vector<8x8xf32>
    %116 = vector.extract_strided_slice %30 {offsets = [0, 24], sizes = [8, 8], strides = [1, 1]} : vector<16x32xf32> to vector<8x8xf32>
    %117 = tpu.transpose %115, [1, 0] : vector<8x8xf32> -> vector<8x8xf32>
    %cst_48 = arith.constant dense<0.000000e+00> : vector<8x8xf32>
    %118 = tpu.matmul %114, %117, %cst_48 {dimension_numbers = #tpu.dot_dimension_numbers<[1], [0], [0], [1], [0, 0, 1, 1], [], []>} : vector<8x8xf32>, vector<8x8xf32>, vector<8x8xf32> -> vector<8x8xf32>
    %cst_49 = arith.constant 0.353553385 : f32
    %119 = vector.broadcast %cst_49 : f32 to vector<8x8xf32>
    %120 = arith.mulf %118, %119 : vector<8x8xf32>
    %cst_50 = arith.constant 0.000000e+00 : f32
    %121 = vector.broadcast %cst_50 : f32 to vector<1x8xf32>
    %122 = arith.cmpf oeq, %32, %121 : vector<1x8xf32>
    %cst_51 = arith.constant -1.000000e+09 : f32
    %123 = vector.shape_cast %122 : vector<1x8xi1> to vector<1x8xi1>
    %124 = vector.broadcast %123 : vector<1x8xi1> to vector<8x8xi1>
    %125 = vector.broadcast %cst_51 : f32 to vector<8x8xf32>
    %126 = arith.select %124, %125, %120 : vector<8x8xi1>, vector<8x8xf32>
    %cst_52 = arith.constant dense<0xFF800000> : vector<8xf32>
    %127 = vector.multi_reduction <maximumf>, %126, %cst_52 [1] : vector<8x8xf32> to vector<8xf32>
    %128 = vector.shape_cast %127 : vector<8xf32> to vector<8x1xf32>
    %129 = vector.broadcast %128 : vector<8x1xf32> to vector<8x8xf32>
    %130 = arith.subf %126, %129 : vector<8x8xf32>
    %131 = math.exp %130 : vector<8x8xf32>
    %cst_53 = arith.constant dense<0.000000e+00> : vector<8xf32>
    %132 = vector.multi_reduction <add>, %131, %cst_53 [1] : vector<8x8xf32> to vector<8xf32>
    %133 = vector.shape_cast %132 : vector<8xf32> to vector<8x1xf32>
    %134 = tpu.reciprocal %133 {approx = true} : vector<8x1xf32> -> vector<8x1xf32>
    %135 = vector.broadcast %134 : vector<8x1xf32> to vector<8x8xf32>
    %136 = arith.mulf %131, %135 : vector<8x8xf32>
    %c0_54 = arith.constant 0 : index
    %c3 = arith.constant 3 : index
    %c0_55 = arith.constant 0 : index
    %c0_56 = arith.constant 0 : index
    %137 = vector.load %arg14[%c0_54, %c3, %c0_55, %c0_56] : memref<2x4x8x8xf32, #tpu.memory_space<vmem>>, vector<1x1x8x8xf32>
    %138 = vector.shape_cast %137 : vector<1x1x8x8xf32> to vector<8x8xf32>
    %139 = vector.shape_cast %136 : vector<8x8xf32> to vector<1x1x8x8xf32>
    tpu.vector_store %arg14[%c0_54, %c3, %c0_55, %c0_56], %139 {strides = array<i32>} : memref<2x4x8x8xf32, #tpu.memory_space<vmem>>, vector<1x1x8x8xf32>,
    %cst_57 = arith.constant dense<0.000000e+00> : vector<8x8xf32>
    %140 = tpu.matmul %136, %116, %cst_57 {dimension_numbers = #tpu.dot_dimension_numbers<[1], [0], [0], [1], [0, 0, 1, 1], [], []>} : vector<8x8xf32>, vector<8x8xf32>, vector<8x8xf32> -> vector<8x8xf32>
    %141 = tpu.concatenate %59, %86, %113, %140 in 1 : vector<8x8xf32>, vector<8x8xf32>, vector<8x8xf32>, vector<8x8xf32> -> vector<8x32xf32>
    %c1_58 = arith.constant 1 : index
    %c0_59 = arith.constant 0 : index
    %c0_60 = arith.constant 0 : index
    %142 = vector.load %arg2[%c1_58, %c0_59, %c0_60] : memref<2x1x8xf32, #tpu.memory_space<vmem>>, vector<1x1x8xf32>
    %143 = vector.shape_cast %142 : vector<1x1x8xf32> to vector<1x8xf32>
    %144 = vector.extract_strided_slice %28 {offsets = [8, 0], sizes = [8, 8], strides = [1, 1]} : vector<16x32xf32> to vector<8x8xf32>
    %145 = vector.extract_strided_slice %29 {offsets = [8, 0], sizes = [8, 8], strides = [1, 1]} : vector<16x32xf32> to vector<8x8xf32>
    %146 = vector.extract_strided_slice %30 {offsets = [8, 0], sizes = [8, 8], strides = [1, 1]} : vector<16x32xf32> to vector<8x8xf32>
    %147 = tpu.transpose %145, [1, 0] : vector<8x8xf32> -> vector<8x8xf32>
    %cst_61 = arith.constant dense<0.000000e+00> : vector<8x8xf32>
    %148 = tpu.matmul %144, %147, %cst_61 {dimension_numbers = #tpu.dot_dimension_numbers<[1], [0], [0], [1], [0, 0, 1, 1], [], []>} : vector<8x8xf32>, vector<8x8xf32>, vector<8x8xf32> -> vector<8x8xf32>
    %cst_62 = arith.constant 0.353553385 : f32
    %149 = vector.broadcast %cst_62 : f32 to vector<8x8xf32>
    %150 = arith.mulf %148, %149 : vector<8x8xf32>
    %cst_63 = arith.constant 0.000000e+00 : f32
    %151 = vector.broadcast %cst_63 : f32 to vector<1x8xf32>
    %152 = arith.cmpf oeq, %143, %151 : vector<1x8xf32>
    %cst_64 = arith.constant -1.000000e+09 : f32
    %153 = vector.shape_cast %152 : vector<1x8xi1> to vector<1x8xi1>
    %154 = vector.broadcast %153 : vector<1x8xi1> to vector<8x8xi1>
    %155 = vector.broadcast %cst_64 : f32 to vector<8x8xf32>
    %156 = arith.select %154, %155, %150 : vector<8x8xi1>, vector<8x8xf32>
    %cst_65 = arith.constant dense<0xFF800000> : vector<8xf32>
    %157 = vector.multi_reduction <maximumf>, %156, %cst_65 [1] : vector<8x8xf32> to vector<8xf32>
    %158 = vector.shape_cast %157 : vector<8xf32> to vector<8x1xf32>
    %159 = vector.broadcast %158 : vector<8x1xf32> to vector<8x8xf32>
    %160 = arith.subf %156, %159 : vector<8x8xf32>
    %161 = math.exp %160 : vector<8x8xf32>
    %cst_66 = arith.constant dense<0.000000e+00> : vector<8xf32>
    %162 = vector.multi_reduction <add>, %161, %cst_66 [1] : vector<8x8xf32> to vector<8xf32>
    %163 = vector.shape_cast %162 : vector<8xf32> to vector<8x1xf32>
    %164 = tpu.reciprocal %163 {approx = true} : vector<8x1xf32> -> vector<8x1xf32>
    %165 = vector.broadcast %164 : vector<8x1xf32> to vector<8x8xf32>
    %166 = arith.mulf %161, %165 : vector<8x8xf32>
    %c1_67 = arith.constant 1 : index
    %c0_68 = arith.constant 0 : index
    %c0_69 = arith.constant 0 : index
    %c0_70 = arith.constant 0 : index
    %167 = vector.load %arg14[%c1_67, %c0_68, %c0_69, %c0_70] : memref<2x4x8x8xf32, #tpu.memory_space<vmem>>, vector<1x1x8x8xf32>
    %168 = vector.shape_cast %167 : vector<1x1x8x8xf32> to vector<8x8xf32>
    %169 = vector.shape_cast %166 : vector<8x8xf32> to vector<1x1x8x8xf32>
    tpu.vector_store %arg14[%c1_67, %c0_68, %c0_69, %c0_70], %169 {strides = array<i32>} : memref<2x4x8x8xf32, #tpu.memory_space<vmem>>, vector<1x1x8x8xf32>,
    %cst_71 = arith.constant dense<0.000000e+00> : vector<8x8xf32>
    %170 = tpu.matmul %166, %146, %cst_71 {dimension_numbers = #tpu.dot_dimension_numbers<[1], [0], [0], [1], [0, 0, 1, 1], [], []>} : vector<8x8xf32>, vector<8x8xf32>, vector<8x8xf32> -> vector<8x8xf32>
    %171 = vector.extract_strided_slice %28 {offsets = [8, 8], sizes = [8, 8], strides = [1, 1]} : vector<16x32xf32> to vector<8x8xf32>
    %172 = vector.extract_strided_slice %29 {offsets = [8, 8], sizes = [8, 8], strides = [1, 1]} : vector<16x32xf32> to vector<8x8xf32>
    %173 = vector.extract_strided_slice %30 {offsets = [8, 8], sizes = [8, 8], strides = [1, 1]} : vector<16x32xf32> to vector<8x8xf32>
    %174 = tpu.transpose %172, [1, 0] : vector<8x8xf32> -> vector<8x8xf32>
    %cst_72 = arith.constant dense<0.000000e+00> : vector<8x8xf32>
    %175 = tpu.matmul %171, %174, %cst_72 {dimension_numbers = #tpu.dot_dimension_numbers<[1], [0], [0], [1], [0, 0, 1, 1], [], []>} : vector<8x8xf32>, vector<8x8xf32>, vector<8x8xf32> -> vector<8x8xf32>
    %cst_73 = arith.constant 0.353553385 : f32
    %176 = vector.broadcast %cst_73 : f32 to vector<8x8xf32>
    %177 = arith.mulf %175, %176 : vector<8x8xf32>
    %cst_74 = arith.constant 0.000000e+00 : f32
    %178 = vector.broadcast %cst_74 : f32 to vector<1x8xf32>
    %179 = arith.cmpf oeq, %143, %178 : vector<1x8xf32>
    %cst_75 = arith.constant -1.000000e+09 : f32
    %180 = vector.shape_cast %179 : vector<1x8xi1> to vector<1x8xi1>
    %181 = vector.broadcast %180 : vector<1x8xi1> to vector<8x8xi1>
    %182 = vector.broadcast %cst_75 : f32 to vector<8x8xf32>
    %183 = arith.select %181, %182, %177 : vector<8x8xi1>, vector<8x8xf32>
    %cst_76 = arith.constant dense<0xFF800000> : vector<8xf32>
    %184 = vector.multi_reduction <maximumf>, %183, %cst_76 [1] : vector<8x8xf32> to vector<8xf32>
    %185 = vector.shape_cast %184 : vector<8xf32> to vector<8x1xf32>
    %186 = vector.broadcast %185 : vector<8x1xf32> to vector<8x8xf32>
    %187 = arith.subf %183, %186 : vector<8x8xf32>
    %188 = math.exp %187 : vector<8x8xf32>
    %cst_77 = arith.constant dense<0.000000e+00> : vector<8xf32>
    %189 = vector.multi_reduction <add>, %188, %cst_77 [1] : vector<8x8xf32> to vector<8xf32>
    %190 = vector.shape_cast %189 : vector<8xf32> to vector<8x1xf32>
    %191 = tpu.reciprocal %190 {approx = true} : vector<8x1xf32> -> vector<8x1xf32>
    %192 = vector.broadcast %191 : vector<8x1xf32> to vector<8x8xf32>
    %193 = arith.mulf %188, %192 : vector<8x8xf32>
    %c1_78 = arith.constant 1 : index
    %c1_79 = arith.constant 1 : index
    %c0_80 = arith.constant 0 : index
    %c0_81 = arith.constant 0 : index
    %194 = vector.load %arg14[%c1_78, %c1_79, %c0_80, %c0_81] : memref<2x4x8x8xf32, #tpu.memory_space<vmem>>, vector<1x1x8x8xf32>
    %195 = vector.shape_cast %194 : vector<1x1x8x8xf32> to vector<8x8xf32>
    %196 = vector.shape_cast %193 : vector<8x8xf32> to vector<1x1x8x8xf32>
    tpu.vector_store %arg14[%c1_78, %c1_79, %c0_80, %c0_81], %196 {strides = array<i32>} : memref<2x4x8x8xf32, #tpu.memory_space<vmem>>, vector<1x1x8x8xf32>,
    %cst_82 = arith.constant dense<0.000000e+00> : vector<8x8xf32>
    %197 = tpu.matmul %193, %173, %cst_82 {dimension_numbers = #tpu.dot_dimension_numbers<[1], [0], [0], [1], [0, 0, 1, 1], [], []>} : vector<8x8xf32>, vector<8x8xf32>, vector<8x8xf32> -> vector<8x8xf32>
    %198 = vector.extract_strided_slice %28 {offsets = [8, 16], sizes = [8, 8], strides = [1, 1]} : vector<16x32xf32> to vector<8x8xf32>
    %199 = vector.extract_strided_slice %29 {offsets = [8, 16], sizes = [8, 8], strides = [1, 1]} : vector<16x32xf32> to vector<8x8xf32>
    %200 = vector.extract_strided_slice %30 {offsets = [8, 16], sizes = [8, 8], strides = [1, 1]} : vector<16x32xf32> to vector<8x8xf32>
    %201 = tpu.transpose %199, [1, 0] : vector<8x8xf32> -> vector<8x8xf32>
    %cst_83 = arith.constant dense<0.000000e+00> : vector<8x8xf32>
    %202 = tpu.matmul %198, %201, %cst_83 {dimension_numbers = #tpu.dot_dimension_numbers<[1], [0], [0], [1], [0, 0, 1, 1], [], []>} : vector<8x8xf32>, vector<8x8xf32>, vector<8x8xf32> -> vector<8x8xf32>
    %cst_84 = arith.constant 0.353553385 : f32
    %203 = vector.broadcast %cst_84 : f32 to vector<8x8xf32>
    %204 = arith.mulf %202, %203 : vector<8x8xf32>
    %cst_85 = arith.constant 0.000000e+00 : f32
    %205 = vector.broadcast %cst_85 : f32 to vector<1x8xf32>
    %206 = arith.cmpf oeq, %143, %205 : vector<1x8xf32>
    %cst_86 = arith.constant -1.000000e+09 : f32
    %207 = vector.shape_cast %206 : vector<1x8xi1> to vector<1x8xi1>
    %208 = vector.broadcast %207 : vector<1x8xi1> to vector<8x8xi1>
    %209 = vector.broadcast %cst_86 : f32 to vector<8x8xf32>
    %210 = arith.select %208, %209, %204 : vector<8x8xi1>, vector<8x8xf32>
    %cst_87 = arith.constant dense<0xFF800000> : vector<8xf32>
    %211 = vector.multi_reduction <maximumf>, %210, %cst_87 [1] : vector<8x8xf32> to vector<8xf32>
    %212 = vector.shape_cast %211 : vector<8xf32> to vector<8x1xf32>
    %213 = vector.broadcast %212 : vector<8x1xf32> to vector<8x8xf32>
    %214 = arith.subf %210, %213 : vector<8x8xf32>
    %215 = math.exp %214 : vector<8x8xf32>
    %cst_88 = arith.constant dense<0.000000e+00> : vector<8xf32>
    %216 = vector.multi_reduction <add>, %215, %cst_88 [1] : vector<8x8xf32> to vector<8xf32>
    %217 = vector.shape_cast %216 : vector<8xf32> to vector<8x1xf32>
    %218 = tpu.reciprocal %217 {approx = true} : vector<8x1xf32> -> vector<8x1xf32>
    %219 = vector.broadcast %218 : vector<8x1xf32> to vector<8x8xf32>
    %220 = arith.mulf %215, %219 : vector<8x8xf32>
    %c1_89 = arith.constant 1 : index
    %c2_90 = arith.constant 2 : index
    %c0_91 = arith.constant 0 : index
    %c0_92 = arith.constant 0 : index
    %221 = vector.load %arg14[%c1_89, %c2_90, %c0_91, %c0_92] : memref<2x4x8x8xf32, #tpu.memory_space<vmem>>, vector<1x1x8x8xf32>
    %222 = vector.shape_cast %221 : vector<1x1x8x8xf32> to vector<8x8xf32>
    %223 = vector.shape_cast %220 : vector<8x8xf32> to vector<1x1x8x8xf32>
    tpu.vector_store %arg14[%c1_89, %c2_90, %c0_91, %c0_92], %223 {strides = array<i32>} : memref<2x4x8x8xf32, #tpu.memory_space<vmem>>, vector<1x1x8x8xf32>,
    %cst_93 = arith.constant dense<0.000000e+00> : vector<8x8xf32>
    %224 = tpu.matmul %220, %200, %cst_93 {dimension_numbers = #tpu.dot_dimension_numbers<[1], [0], [0], [1], [0, 0, 1, 1], [], []>} : vector<8x8xf32>, vector<8x8xf32>, vector<8x8xf32> -> vector<8x8xf32>
    %225 = vector.extract_strided_slice %28 {offsets = [8, 24], sizes = [8, 8], strides = [1, 1]} : vector<16x32xf32> to vector<8x8xf32>
    %226 = vector.extract_strided_slice %29 {offsets = [8, 24], sizes = [8, 8], strides = [1, 1]} : vector<16x32xf32> to vector<8x8xf32>
    %227 = vector.extract_strided_slice %30 {offsets = [8, 24], sizes = [8, 8], strides = [1, 1]} : vector<16x32xf32> to vector<8x8xf32>
    %228 = tpu.transpose %226, [1, 0] : vector<8x8xf32> -> vector<8x8xf32>
    %cst_94 = arith.constant dense<0.000000e+00> : vector<8x8xf32>
    %229 = tpu.matmul %225, %228, %cst_94 {dimension_numbers = #tpu.dot_dimension_numbers<[1], [0], [0], [1], [0, 0, 1, 1], [], []>} : vector<8x8xf32>, vector<8x8xf32>, vector<8x8xf32> -> vector<8x8xf32>
    %cst_95 = arith.constant 0.353553385 : f32
    %230 = vector.broadcast %cst_95 : f32 to vector<8x8xf32>
    %231 = arith.mulf %229, %230 : vector<8x8xf32>
    %cst_96 = arith.constant 0.000000e+00 : f32
    %232 = vector.broadcast %cst_96 : f32 to vector<1x8xf32>
    %233 = arith.cmpf oeq, %143, %232 : vector<1x8xf32>
    %cst_97 = arith.constant -1.000000e+09 : f32
    %234 = vector.shape_cast %233 : vector<1x8xi1> to vector<1x8xi1>
    %235 = vector.broadcast %234 : vector<1x8xi1> to vector<8x8xi1>
    %236 = vector.broadcast %cst_97 : f32 to vector<8x8xf32>
    %237 = arith.select %235, %236, %231 : vector<8x8xi1>, vector<8x8xf32>
    %cst_98 = arith.constant dense<0xFF800000> : vector<8xf32>
    %238 = vector.multi_reduction <maximumf>, %237, %cst_98 [1] : vector<8x8xf32> to vector<8xf32>
    %239 = vector.shape_cast %238 : vector<8xf32> to vector<8x1xf32>
    %240 = vector.broadcast %239 : vector<8x1xf32> to vector<8x8xf32>
    %241 = arith.subf %237, %240 : vector<8x8xf32>
    %242 = math.exp %241 : vector<8x8xf32>
    %cst_99 = arith.constant dense<0.000000e+00> : vector<8xf32>
    %243 = vector.multi_reduction <add>, %242, %cst_99 [1] : vector<8x8xf32> to vector<8xf32>
    %244 = vector.shape_cast %243 : vector<8xf32> to vector<8x1xf32>
    %245 = tpu.reciprocal %244 {approx = true} : vector<8x1xf32> -> vector<8x1xf32>
    %246 = vector.broadcast %245 : vector<8x1xf32> to vector<8x8xf32>
    %247 = arith.mulf %242, %246 : vector<8x8xf32>
    %c1_100 = arith.constant 1 : index
    %c3_101 = arith.constant 3 : index
    %c0_102 = arith.constant 0 : index
    %c0_103 = arith.constant 0 : index
    %248 = vector.load %arg14[%c1_100, %c3_101, %c0_102, %c0_103] : memref<2x4x8x8xf32, #tpu.memory_space<vmem>>, vector<1x1x8x8xf32>
    %249 = vector.shape_cast %248 : vector<1x1x8x8xf32> to vector<8x8xf32>
    %250 = vector.shape_cast %247 : vector<8x8xf32> to vector<1x1x8x8xf32>
    tpu.vector_store %arg14[%c1_100, %c3_101, %c0_102, %c0_103], %250 {strides = array<i32>} : memref<2x4x8x8xf32, #tpu.memory_space<vmem>>, vector<1x1x8x8xf32>,
    %cst_104 = arith.constant dense<0.000000e+00> : vector<8x8xf32>
    %251 = tpu.matmul %247, %227, %cst_104 {dimension_numbers = #tpu.dot_dimension_numbers<[1], [0], [0], [1], [0, 0, 1, 1], [], []>} : vector<8x8xf32>, vector<8x8xf32>, vector<8x8xf32> -> vector<8x8xf32>
    %252 = tpu.concatenate %170, %197, %224, %251 in 1 : vector<8x8xf32>, vector<8x8xf32>, vector<8x8xf32>, vector<8x8xf32> -> vector<8x32xf32>
    %253 = tpu.concatenate %141, %252 in 0 : vector<8x32xf32>, vector<8x32xf32> -> vector<16x32xf32>
    %c0_105 = arith.constant 0 : index
    %c0_106 = arith.constant 0 : index
    %254 = vector.load %arg7[%c0_105, %c0_106] : memref<32x32xf32, #tpu.memory_space<vmem>>, vector<32x32xf32>
    %cst_107 = arith.constant dense<0.000000e+00> : vector<16x32xf32>
    %255 = tpu.matmul %253, %254, %cst_107 {dimension_numbers = #tpu.dot_dimension_numbers<[1], [0], [0], [1], [0, 0, 1, 1], [], []>} : vector<16x32xf32>, vector<32x32xf32>, vector<16x32xf32> -> vector<16x32xf32>
    %c0_108 = arith.constant 0 : index
    %c0_109 = arith.constant 0 : index
    %256 = vector.load %arg8[%c0_108, %c0_109] : memref<1x32xf32, #tpu.memory_space<vmem>>, vector<1x32xf32>
    %257 = vector.broadcast %256 : vector<1x32xf32> to vector<16x32xf32>
    %258 = arith.addf %255, %257 : vector<16x32xf32>
    %259 = arith.addf %0, %258 : vector<16x32xf32>
    %cst_110 = arith.constant dense<0.000000e+00> : vector<16xf32>
    %260 = vector.multi_reduction <add>, %259, %cst_110 [1] : vector<16x32xf32> to vector<16xf32>
    %261 = vector.shape_cast %260 : vector<16xf32> to vector<16x1xf32>
    %cst_111 = arith.constant 3.200000e+01 : f32
    %262 = vector.broadcast %cst_111 : f32 to vector<16x1xf32>
    %263 = arith.divf %261, %262 : vector<16x1xf32>
    %264 = vector.broadcast %263 : vector<16x1xf32> to vector<16x32xf32>
    %265 = arith.subf %259, %264 : vector<16x32xf32>
    %266 = arith.mulf %265, %265 : vector<16x32xf32>
    %cst_112 = arith.constant dense<0.000000e+00> : vector<16xf32>
    %267 = vector.multi_reduction <add>, %266, %cst_112 [1] : vector<16x32xf32> to vector<16xf32>
    %268 = vector.shape_cast %267 : vector<16xf32> to vector<16x1xf32>
    %cst_113 = arith.constant 3.100000e+01 : f32
    %269 = vector.broadcast %cst_113 : f32 to vector<16x1xf32>
    %270 = arith.divf %268, %269 : vector<16x1xf32>
    %271 = vector.broadcast %1 : vector<1x32xf32> to vector<16x32xf32>
    %272 = arith.mulf %271, %265 : vector<16x32xf32>
    %273 = math.sqrt %270 : vector<16x1xf32>
    %cst_114 = arith.constant 9.99999997E-7 : f32
    %274 = vector.broadcast %cst_114 : f32 to vector<16x1xf32>
    %275 = arith.addf %273, %274 : vector<16x1xf32>
    %276 = vector.broadcast %275 : vector<16x1xf32> to vector<16x32xf32>
    %277 = arith.divf %272, %276 : vector<16x32xf32>
    %278 = vector.broadcast %2 : vector<1x32xf32> to vector<16x32xf32>
    %279 = arith.addf %277, %278 : vector<16x32xf32>
    %c0_115 = arith.constant 0 : index
    %c0_116 = arith.constant 0 : index
    %280 = vector.load %arg9[%c0_115, %c0_116] : memref<32x64xf32, #tpu.memory_space<vmem>>, vector<32x64xf32>
    %cst_117 = arith.constant dense<0.000000e+00> : vector<16x64xf32>
    %281 = tpu.matmul %279, %280, %cst_117 {dimension_numbers = #tpu.dot_dimension_numbers<[1], [0], [0], [1], [0, 0, 1, 1], [], []>} : vector<16x32xf32>, vector<32x64xf32>, vector<16x64xf32> -> vector<16x64xf32>
    %c0_118 = arith.constant 0 : index
    %c0_119 = arith.constant 0 : index
    %282 = vector.load %arg10[%c0_118, %c0_119] : memref<1x64xf32, #tpu.memory_space<vmem>>, vector<1x64xf32>
    %283 = vector.broadcast %282 : vector<1x64xf32> to vector<16x64xf32>
    %284 = arith.addf %281, %283 : vector<16x64xf32>
    %cst_120 = arith.constant 0.000000e+00 : f32
    %285 = vector.broadcast %cst_120 : f32 to vector<16x64xf32>
    %286 = arith.maximumf %284, %285 : vector<16x64xf32>
    %c0_121 = arith.constant 0 : index
    %c0_122 = arith.constant 0 : index
    %287 = vector.load %arg11[%c0_121, %c0_122] : memref<64x32xf32, #tpu.memory_space<vmem>>, vector<64x32xf32>
    %cst_123 = arith.constant dense<0.000000e+00> : vector<16x32xf32>
    %288 = tpu.matmul %286, %287, %cst_123 {dimension_numbers = #tpu.dot_dimension_numbers<[1], [0], [0], [1], [0, 0, 1, 1], [], []>} : vector<16x64xf32>, vector<64x32xf32>, vector<16x32xf32> -> vector<16x32xf32>
    %c0_124 = arith.constant 0 : index
    %c0_125 = arith.constant 0 : index
    %289 = vector.load %arg12[%c0_124, %c0_125] : memref<1x32xf32, #tpu.memory_space<vmem>>, vector<1x32xf32>
    %290 = vector.broadcast %289 : vector<1x32xf32> to vector<16x32xf32>
    %291 = arith.addf %288, %290 : vector<16x32xf32>
    %292 = arith.addf %259, %291 : vector<16x32xf32>
    %c0_126 = arith.constant 0 : index
    %c0_127 = arith.constant 0 : index
    %293 = vector.load %arg13[%c0_126, %c0_127] : memref<16x32xf32, #tpu.memory_space<vmem>>, vector<16x32xf32>
    tpu.vector_store %arg13[%c0_126, %c0_127], %292 {strides = array<i32>} : memref<16x32xf32, #tpu.memory_space<vmem>>, vector<16x32xf32>,
    return
  }
  func.func @transform_0(%arg0: i32) -> (i32, i32) {
    %c0_i32 = arith.constant 0 : i32
    %c0_i32_0 = arith.constant 0 : i32
    %c0_i32_1 = arith.constant 0 : i32
    return %c0_i32, %c0_i32_0 : i32, i32
  }
  func.func @transform_1(%arg0: i32) -> (i32, i32, i32) {
    %c0_i32 = arith.constant 0 : i32
    %c0_i32_0 = arith.constant 0 : i32
    %c0_i32_1 = arith.constant 0 : i32
    %c0_i32_2 = arith.constant 0 : i32
    return %c0_i32, %c0_i32_0, %c0_i32_1 : i32, i32, i32
  }
  func.func @transform_2(%arg0: i32) -> (i32, i32) {
    %c0_i32 = arith.constant 0 : i32
    %c0_i32_0 = arith.constant 0 : i32
    %c0_i32_1 = arith.constant 0 : i32
    return %c0_i32, %c0_i32_0 : i32, i32
  }
  func.func @transform_3(%arg0: i32) -> (i32, i32) {
    %c0_i32 = arith.constant 0 : i32
    %c0_i32_0 = arith.constant 0 : i32
    %c0_i32_1 = arith.constant 0 : i32
    return %c0_i32, %c0_i32_0 : i32, i32
  }
  func.func @transform_4(%arg0: i32) -> (i32, i32) {
    %c0_i32 = arith.constant 0 : i32
    %c0_i32_0 = arith.constant 0 : i32
    %c0_i32_1 = arith.constant 0 : i32
    return %c0_i32, %c0_i32_0 : i32, i32
  }
  func.func @transform_5(%arg0: i32) -> (i32, i32) {
    %c0_i32 = arith.constant 0 : i32
    %c0_i32_0 = arith.constant 0 : i32
    %c0_i32_1 = arith.constant 0 : i32
    return %c0_i32, %c0_i32_0 : i32, i32
  }
  func.func @transform_6(%arg0: i32) -> (i32, i32) {
    %c0_i32 = arith.constant 0 : i32
    %c0_i32_0 = arith.constant 0 : i32
    %c0_i32_1 = arith.constant 0 : i32
    return %c0_i32, %c0_i32_0 : i32, i32
  }
  func.func @transform_7(%arg0: i32) -> (i32, i32) {
    %c0_i32 = arith.constant 0 : i32
    %c0_i32_0 = arith.constant 0 : i32
    %c0_i32_1 = arith.constant 0 : i32
    return %c0_i32, %c0_i32_0 : i32, i32
  }
  func.func @transform_8(%arg0: i32) -> (i32, i32) {
    %c0_i32 = arith.constant 0 : i32
    %c0_i32_0 = arith.constant 0 : i32
    %c0_i32_1 = arith.constant 0 : i32
    return %c0_i32, %c0_i32_0 : i32, i32
  }
  func.func @transform_9(%arg0: i32) -> (i32, i32) {
    %c0_i32 = arith.constant 0 : i32
    %c0_i32_0 = arith.constant 0 : i32
    %c0_i32_1 = arith.constant 0 : i32
    return %c0_i32, %c0_i32_0 : i32, i32
  }
  func.func @transform_10(%arg0: i32) -> (i32, i32) {
    %c0_i32 = arith.constant 0 : i32
    %c0_i32_0 = arith.constant 0 : i32
    %c0_i32_1 = arith.constant 0 : i32
    return %c0_i32, %c0_i32_0 : i32, i32
  }
  func.func @transform_11(%arg0: i32) -> (i32, i32) {
    %c0_i32 = arith.constant 0 : i32
    %c0_i32_0 = arith.constant 0 : i32
    %c0_i32_1 = arith.constant 0 : i32
    return %c0_i32, %c0_i32_0 : i32, i32
  }
  func.func @transform_12(%arg0: i32) -> (i32, i32) {
    %c0_i32 = arith.constant 0 : i32
    %c0_i32_0 = arith.constant 0 : i32
    %c0_i32_1 = arith.constant 0 : i32
    return %c0_i32, %c0_i32_0 : i32, i32
  }
  func.func @transform_13(%arg0: i32) -> (i32, i32, i32, i32) {
    %c0_i32 = arith.constant 0 : i32
    %c0_i32_0 = arith.constant 0 : i32
    %c0_i32_1 = arith.constant 0 : i32
    %c0_i32_2 = arith.constant 0 : i32
    %c0_i32_3 = arith.constant 0 : i32
    return %c0_i32, %c0_i32_0, %c0_i32_1, %c0_i32_2 : i32, i32, i32, i32
  }
}

</mosaic_0001>

<bundles_post_ra>
// kernel: encoder_layer.1
= control target key start
LH: loop header
LB: loop body
LE: loop exit
PB: predicated region body
PF: predicated region fallthrough
CT: control target
= control target key end

     0   :  { %19 = vsyncpa [#allocation3], 0  ;;  %s1625_s0 = inlined_call_operand.hbm [shape: f32[16,32], index: 0, kind: input, shape index: {}]   ;;  %s1626_s1 = inlined_call_operand.vmem [shape: f32[2,1,8], index: 1, kind: input, shape index: {}]   ;;  %s1627_s2 = inlined_call_operand.vmem [shape: f32[1,32], index: 2, kind: input, shape index: {}]   ;;  %s1628_s3 = inlined_call_operand.vmem [shape: f32[1,32], index: 3, kind: input, shape index: {}]   ;;  %s1629_s4 = inlined_call_operand.vmem [shape: f32[32,96], index: 4, kind: input, shape index: {}]   ;;  %s1630_s5 = inlined_call_operand.vmem [shape: f32[1,96], index: 5, kind: input, shape index: {}]   ;;  %s1631_s6 = inlined_call_operand.vmem [shape: f32[32,32], index: 6, kind: input, shape index: {}]   ;;  %s1632_s7 = inlined_call_operand.vmem [shape: f32[1,32], index: 7, kind: input, shape index: {}]   ;;  %s1633_s8 = inlined_call_operand.vmem [shape: f32[32,64], index: 8, kind: input, shape index: {}]   ;;  %s1634_s9 = inlined_call_operand.vmem [shape: f32[1,64], index: 9, kind: input, shape index: {}]   ;;  %s1635_s10 = inlined_call_operand.vmem [shape: f32[64,32], index: 10, kind: input, shape index: {}]   ;;  %s1636_s11 = inlined_call_operand.vmem [shape: f32[1,32], index: 11, kind: input, shape index: {}]   ;;  %s1637_s12 = inlined_call_operand.hbm [shape: f32[16,32], index: 12, kind: output, shape index: {0}]   ;;  %s1638_s13 = inlined_call_operand.hbm [shape: f32[2,4,8,8], index: 13, kind: output, shape index: {1}]  }
   0x1   :  { %20 = vsyncpa [#allocation4], 0 }
   0x2   :  { %21 = vsyncpa [#allocation7], 0  ;;  %s26_s27 = sshll.u32 %s1625_s0, 4  ;;  %s1227_s28 = smov [#allocation2]   ;;  %s27_s27 = int_to_ptr.hbm [resolvable:$true] %s26_s27 }
   0x3   :  { %s28_s29 = sshll.u32 %s1227_s28, 4  ;;  %s1228_s30 = smov 128   ;;  %s29_s29 = int_to_ptr.vmem [resolvable:$true] %s28_s29 }
   0x4   :  { %s1229_s14 = smov 8  }
   0x5   :  { %34 = dma.hbm_to_vmem [thread:$0]  %s27_s27, 256, %s29_s29, [#allocation3], %s1228_s30, %s1228_s30, %s1229_s14  }
   0x6   :  { %1221 = dma.done.wait [#allocation3], 256  }
   0x7   :  { %1222 = vsyncadd [#allocation3], 4294967040  ;;  %vm65_vm0 = vcmask 261120   ;;  %v1324_v0 = vld [vmem:[#allocation2] sm:$0xff]  ;;  %v1230_v2 = vmov 32.0   ;;  %v1231_v14 = vmov 31.0  }
   0x8   :  { %v66_v1 = vsel %vm65_vm0, %v1324_v0, 0.0  ;;  %1097 = vrcp.f32 %v1230_v2  ;;  %v169_v18 = vld [vmem:[%s1629_s4 + $0x18] sm:$0xff]  ;;  %v168_v19 = vld [vmem:[%s1629_s4 + $0x10] sm:$0xff]  ;;  %v167_v21 = vld [vmem:[%s1629_s4 + $0x8] sm:$0xff]  ;;  %s1232_s26 = smov 120   ;;  %s1234_s27 = smov 96  }
   0x9   :  { %67 = vadd.xlane.f32.xlu0 %v66_v1  ;;  %1099 = vrcp.f32 %v1231_v14  ;;  %192 = vmatpush.msra.mxu0 %v169_v18  ;;  %v166_v22 = vld [vmem:[%s1629_s4] sm:$0xff]  ;;  %v1348_v31 = vld [vmem:[#allocation2 + $0x8] sm:$0xff]  ;;  %s1235_s28 = smov 64   ;;  %vm207_vm9 = vcmask 64512   ;;  %v1237_v1 = vmov 0   ;;  %s1238_s15 = smov 80  }
   0xa   :  { %v69_v33 = vsel %vm65_vm0, %v1348_v31, 0.0  ;;  %v1355_v44 = vld [vmem:[%s1627_s2] ss:$0 sm:$0xff]  ;;  %s1239_s16 = smov 56   ;;  %s1240_s17 = smov 104  }
   0xb   :  { %193 = vmatpush.msra.mxu0 %v168_v19  ;;  %70 = vadd.xlane.f32.xlu2 %v69_v33  ;;  %v1361_v51 = vld [vmem:[%s1628_s3] ss:$0 sm:$0xff]  ;;  %s1233_s3 = smov 88   ;;  %s1241_s18 = smov 72  }
   0xc   :  { %v1368_v55 = vld [vmem:[%s1630_s5] ss:$0 sm:$0xff]  ;;  %s1236_s5 = smov 112   ;;  %s1242_s19 = smov 48  }
   0xd   :  { %194 = vmatpush.msra.mxu0 %v167_v21  ;;  %v203_v63 = vld [vmem:[%s1626_s1] sm:$0x1]  ;;  %s1244_s4 = smov 16   ;;  %s1245_s22 = smov 24  }
   0xe   :  { %v1098_v3 = vpop.eup %1097  ;;  %vm233_vm10 = vcmp.eq.f32.partialorder %v203_v63, 0.0  ;;  %s1246_s0 = smov [#allocation6]   ;;  %s1006_s21 = sshll.u32 %s1637_s12, 4  ;;  %s1007_s21 = int_to_ptr.hbm [resolvable:$true] %s1006_s21 }
   0xf   :  { %v73_v4 = vmul.f32 32.0, %v1098_v3  ;;  %vm77_vm1 = vweird.f32 %v1098_v3  ;;  %v1100_v15 = vpop.eup %1099  ;;  %195 = vmatpush.msra.mxu0 %v166_v22  ;;  %v234_v2 = vsel %vm233_vm10, 1, %v1237_v1 }
  0x10   :  { %v92_v16 = vmul.f32 31.0, %v1100_v15  ;;  %vm96_vm2 = vweird.f32 %v1100_v15 }
  0x11   :  { %v74_v5 = vsub.f32 1.0, %v73_v4 }
  0x12   :  { %v93_v17 = vsub.f32 1.0, %v92_v16 }
  0x13   :  { %v75_v6 = vmul.f32 %v1098_v3, %v74_v5 }
  0x14   :  { %v94_v20 = vmul.f32 %v1100_v15, %v93_v17 }
  0x15   :  { %v76_v7 = vadd.f32 %v1098_v3, %v75_v6 }
  0x16   :  { %v95_v23 = vadd.f32 %v1100_v15, %v94_v20 }
  0x17   :  { %v1328_v8 = vsel %vm77_vm1, %v1098_v3, %v76_v7  ;;  %v235_v3 = vperm.slane %v234_v2, 0 }
  0x18   :  { %v1345_v24 = vsel %vm96_vm2, %v1100_v15, %v95_v23 }
  0x19   :  { %vm1392_vm11 = vcmp.eq.s32.totalorder %v235_v3, 1 }
  0x7c   :  { %v68_v9 = vpop.xlane.xlu0 %67 }
  0x7d   :  { %v79_v10 = vmul.f32 %v1328_v8, %v68_v9 }
  0x7e   :  { %v71_v58 = vpop.xlane.xlu2 %70 }
  0x7f   :  { %v81_v11 = vsub.f32 %v1324_v0, %v79_v10 }
  0x81   :  { %v83_v12 = vmul.f32 %v81_v11, %v81_v11  ;;  %v103_v49 = vmul.f32 %v1355_v44, %v81_v11 }
  0x83   :  { %v85_v13 = vsel %vm65_vm0, %v83_v12, 0.0 }
  0x84   :  { %86 = vadd.xlane.f32.xlu0 %v85_v13 }
  0xf7   :  { %v87_v25 = vpop.xlane.xlu0 %86 }
  0xf8   :  { %v98_v26 = vmul.f32 %v1345_v24, %v87_v25  ;;  %v80_v25 = vmul.f32 %v1328_v8, %v71_v58 }
  0xfa   :  { %1101 = vrsqrt.f32 %v98_v26  ;;  %vm112_vm3 = vcmp.eq.f32.partialorder %v98_v26, inf  ;;  %v115_v36 = vand.u32 2147483648, %v98_v26  ;;  %vm114_vm4 = vcmp.eq.f32.partialorder %v98_v26, 0.0 }
 0x100   :  { %v1102_v27 = vpop.eup %1101 }
 0x101   :  { %v106_v28 = vmul.f32 %v1102_v27, %v98_v26 }
 0x103   :  { %v107_v29 = vmul.f32 %v1102_v27, %v106_v28 }
 0x105   :  { %v108_v30 = vmul.f32 0.5, %v107_v29 }
 0x107   :  { %v109_v32 = vsub.f32 1.5, %v108_v30 }
 0x109   :  { %v110_v34 = vmul.f32 %v1102_v27, %v109_v32 }
 0x10b   :  { %v111_v35 = vmul.f32 %v110_v34, %v98_v26 }
 0x10d   :  { %v113_v37 = vsel %vm112_vm3, %v98_v26, %v111_v35  ;;  %v82_v26 = vsub.f32 %v1348_v31, %v80_v25 }
 0x10e   :  { %v116_v38 = vsel %vm114_vm4, %v115_v36, %v113_v37 }
 0x10f   :  { %v129_v39 = vadd.f32 1e-06, %v116_v38  ;;  %v84_v27 = vmul.f32 %v82_v26, %v82_v26 }
 0x111   :  { %1103 = vrcp.f32 %v129_v39  ;;  %v142_v43 = vand.u32 2147483648, %v129_v39  ;;  %v140_v46 = vand.u32 2147483647, %v129_v39  ;;  %vm136_vm6 = vweird.f32 %v129_v39 }
 0x112   :  { %v88_v28 = vsel %vm65_vm0, %v84_v27, 0.0 }
 0x113   :  { %v143_v48 = vor.u32 1.1754944e-38, %v142_v43  ;;  %vm141_vm8 = vcmp.eq.f32.partialorder %v140_v46, 8.507059e+37 }
 0x117   :  { %v1104_v40 = vpop.eup %1103 }
 0x118   :  { %v132_v41 = vmul.f32 %v1104_v40, %v129_v39  ;;  %vm137_vm5 = vweird.f32 %v1104_v40 }
 0x119   :  { %vm138_vm7 = vmor %vm136_vm6, %vm137_vm5  ;;  %vm496_vm5 = vcmask 130048   ;;  %vm498_vm6 = vcmask 195584  }
 0x11a   :  { %v133_v42 = vsub.f32 1.0, %v132_v41 }
 0x11c   :  { %v134_v45 = vmul.f32 %v1104_v40, %v133_v42 }
 0x11e   :  { %v135_v47 = vadd.f32 %v1104_v40, %v134_v45 }
 0x120   :  { %v139_v50 = vsel %vm138_vm7, %v1104_v40, %v135_v47 }
 0x121   :  { %v144_v52 = vsel %vm141_vm8, %v143_v48, %v139_v50 }
 0x122   :  { %v145_v53 = vmul.f32 %v144_v52, %v103_v49 }
 0x124   :  { %v164_v54 = vadd.f32 %v1361_v51, %v145_v53 }
 0x126   :  { %1037 = vmatmul.msk.f32.vlgmr.msra.gmra.mxu0 %vm65_vm0, %v164_v54 }
 0x1a3   :  { %v197_v56 = vpop.f32.mrf.mxu0 }
 0x1a4   :  { %v1371_v57 = vadd.f32 %v1368_v55, %v197_v56 }
 0x1a6   :  { %276 = vrot.lane.b32.xlu2 %v1371_v57, %s1232_s26  ;;  %278 = vrot.lane.b32.xlu0 %v1371_v57, %s1233_s3 }
 0x1a7   :  { %205 = vrot.lane.b32.xlu1 %v1371_v57, %s1234_s27 }
 0x1ae   :  { %250 = vrot.lane.b32.xlu0 %v1371_v57, %s1235_s28 }
 0x1b6   :  { %345 = vrot.lane.b32.xlu0 %v1371_v57, %s1236_s5 }
 0x200   :  { %v277_v61 = vpop.permute.xlu2 %276 }
 0x218   :  { %v279_v59 = vpop.permute.xlu0 %278 }
 0x219   :  { %v206_v60 = vpop.permute.xlu1 %205  ;;  %1042 = vmatpush.xpose.msk.msra.mxu3 %vm207_vm9, %v279_v59 }
 0x21a   :  { %1039 = vmatpush.xpose.msk.msra.mxu1 %vm207_vm9, %v206_v60 }
 0x21c   :  { %1043 = vmatmul.msk.f32.vlgmr.msra.gmra.mxu3 %vm207_vm9, %v277_v61 }
 0x21d   :  { %1040 = vmatmul.msk.f32.vlgmr.msra.gmra.mxu1 %vm207_vm9, %v1371_v57 }
 0x220   :  { %v251_v62 = vpop.permute.xlu0 %250 }
 0x221   :  { %271 = vmatpush.msrb.mxu1 %v251_v62 }
 0x228   :  { %v346_v37 = vpop.permute.xlu0 %345 }
 0x29a   :  { %v229_v4 = vpop.f32.mrf.mxu1 }
 0x29b   :  { %v232_v6 = vmul.f32 0.35355338, %v229_v4  ;;  %v104_v4 = vmul.f32 %v1355_v44, %v82_v26 }
 0x29d   :  { %v237_v7 = vsel %vm1392_vm11, -1e+09, %v232_v6 }
 0x29e   :  { %v238_v9 = vsel %vm207_vm9, %v237_v7, -inf }
 0x29f   :  { %239 = vmax.xlane.f32.xlu1 %v238_v9  ;;  %v301_v10 = vpop.f32.mrf.mxu3 }
 0x2a0   :  { %v304_v11 = vmul.f32 0.35355338, %v301_v10 }
 0x2a2   :  { %v305_v12 = vsel %vm1392_vm11, -1e+09, %v304_v11 }
 0x2a3   :  { %v306_v13 = vsel %vm207_vm9, %v305_v12, -inf }
 0x2a7   :  { %307 = vmax.xlane.f32.xlu1 %v306_v13 }
 0x312   :  { %v240_v14 = vpop.xlane.xlu1 %239 }
 0x313   :  { %v241_v15 = vsub.f32 %v237_v7, %v240_v14 }
 0x315   :  { %v242_v16 = vmul.f32 1.442695, %v241_v15 }
 0x317   :  { %1105 = vpow2.f32 %v242_v16 }
 0x31a   :  { %v308_v17 = vpop.xlane.xlu1 %307 }
 0x31b   :  { %v309_v18 = vsub.f32 %v305_v12, %v308_v17 }
 0x31d   :  { %v1106_v19 = vpop.eup %1105  ;;  %v310_v20 = vmul.f32 1.442695, %v309_v18 }
 0x31e   :  { %v244_v21 = vsel %vm207_vm9, %v1106_v19, 0.0 }
 0x31f   :  { %1107 = vpow2.f32 %v310_v20  ;;  %245 = vadd.xlane.f32.xlu2 %v244_v21 }
 0x325   :  { %v1108_v22 = vpop.eup %1107 }
 0x326   :  { %v312_v23 = vsel %vm207_vm9, %v1108_v22, 0.0 }
 0x327   :  { %313 = vadd.xlane.f32.xlu1 %v312_v23 }
 0x337   :  { %347 = vrot.lane.b32.xlu2 %v1371_v57, %s1238_s15 }
 0x340   :  { %319 = vrot.lane.b32.xlu1 %v1371_v57, %s1239_s16 }
 0x348   :  { %414 = vrot.lane.b32.xlu1 %v1371_v57, %s1240_s17 }
 0x360   :  { %89 = vadd.xlane.f32.xlu2 %v88_v28 }
 0x378   :  { %416 = vrot.lane.b32.xlu2 %v1371_v57, %s1241_s18 }
 0x392   :  { %v246_v29 = vpop.xlane.xlu2 %245 }
 0x393   :  { %1109 = vrcp.f32 %v246_v29 }
 0x399   :  { %v1110_v30 = vpop.eup %1109 }
 0x39a   :  { %v348_v32 = vpop.permute.xlu2 %347  ;;  %v314_v33 = vpop.xlane.xlu1 %313  ;;  %v248_v34 = vmul.f32 %v1110_v30, %v1106_v19 }
 0x39b   :  { %1111 = vrcp.f32 %v314_v33  ;;  %1045 = vmatpush.xpose.msk.msra.mxu1 %vm207_vm9, %v348_v32 }
 0x39c   :  { %249 = vst.msk [vmem:[#allocation6] sm:$0xff] %vm207_vm9, %v248_v34  ;;  %1041 = vmatmul.msk.f32.vlgmr.msrb.gmra.mxu1 %vm207_vm9, %v248_v34 }
 0x3a1   :  { %v1112_v35 = vpop.eup %1111 }
 0x3a2   :  { %v316_v36 = vmul.f32 %v1112_v35, %v1108_v22 }
 0x3a4   :  { %1046 = vmatmul.msk.f32.vlgmr.msra.gmra.mxu1 %vm207_vm9, %v346_v37  ;;  %318 = vst.msk [vmem:[#allocation6 + $0x8] sm:$0xff] %vm207_vm9, %v316_v36 }
 0x3b2   :  { %v320_v38 = vpop.permute.xlu1 %319 }
 0x3b3   :  { %340 = vmatpush.msra.mxu2 %v320_v38 }
 0x3b4   :  { %1044 = vmatmul.msk.f32.vlgmr.msra.gmra.mxu2 %vm207_vm9, %v316_v36 }
 0x3ba   :  { %v415_v45 = vpop.permute.xlu1 %414 }
 0x3d3   :  { %v90_v39 = vpop.xlane.xlu2 %89 }
 0x3d4   :  { %v99_v40 = vmul.f32 %v1345_v24, %v90_v39  ;;  %v1051_v39 = vld [vmem:[%s1626_s1 + $0x1] sm:$0x1]  ;;  %s1243_s1 = smov 40  }
 0x3d5   :  { %vm530_vm3 = vcmp.eq.f32.partialorder %v1051_v39, 0.0 }
 0x3d6   :  { %1113 = vrsqrt.f32 %v99_v40  ;;  %vm124_vm12 = vcmp.eq.f32.partialorder %v99_v40, inf  ;;  %v127_v52 = vand.u32 2147483648, %v99_v40  ;;  %vm126_vm13 = vcmp.eq.f32.partialorder %v99_v40, 0.0 }
 0x3db   :  { %v417_v41 = vpop.permute.xlu2 %416 }
 0x3dc   :  { %v1114_v42 = vpop.eup %1113  ;;  %1048 = vmatpush.xpose.msk.msrb.mxu2 %vm207_vm9, %v417_v41  ;;  %v531_v41 = vsel %vm530_vm3, 1, %v1237_v1 }
 0x3dd   :  { %v118_v43 = vmul.f32 %v1114_v42, %v99_v40 }
 0x3df   :  { %v119_v46 = vmul.f32 %v1114_v42, %v118_v43  ;;  %1049 = vmatmul.msk.f32.vlgmr.msrb.gmra.mxu2 %vm207_vm9, %v415_v45  ;;  %v532_v43 = vperm.slane %v531_v41, 0  ;;  %v798_v41 = vld [vmem:[%s1631_s6 + $0x10] sm:$0xff] }
 0x3e1   :  { %v120_v47 = vmul.f32 0.5, %v119_v46  ;;  %vm1470_vm4 = vcmp.eq.s32.totalorder %v532_v43, 1 }
 0x3e3   :  { %v121_v48 = vsub.f32 1.5, %v120_v47 }
 0x3e5   :  { %v122_v49 = vmul.f32 %v1114_v42, %v121_v48 }
 0x3e7   :  { %v123_v50 = vmul.f32 %v122_v49, %v99_v40 }
 0x3e9   :  { %v125_v53 = vsel %vm124_vm12, %v99_v40, %v123_v50 }
 0x3ea   :  { %v128_v54 = vsel %vm126_vm13, %v127_v52, %v125_v53  ;;  %vm966_vm13 = vcmask 523264  }
 0x3eb   :  { %v130_v56 = vadd.f32 1e-06, %v128_v54 }
 0x3ed   :  { %1115 = vrcp.f32 %v130_v56  ;;  %v157_v61 = vand.u32 2147483648, %v130_v56  ;;  %v155_v63 = vand.u32 2147483647, %v130_v56  ;;  %vm151_vm15 = vweird.f32 %v130_v56 }
 0x3ef   :  { %v158_v3 = vor.u32 1.1754944e-38, %v157_v61  ;;  %vm156_vm2 = vcmp.eq.f32.partialorder %v155_v63, 8.507059e+37 }
 0x3f3   :  { %v1116_v58 = vpop.eup %1115 }
 0x3f4   :  { %v147_v59 = vmul.f32 %v1116_v58, %v130_v56  ;;  %vm152_vm14 = vweird.f32 %v1116_v58 }
 0x3f5   :  { %vm153_vm1 = vmor %vm151_vm15, %vm152_vm14 }
 0x3f6   :  { %v148_v60 = vsub.f32 1.0, %v147_v59 }
 0x3f8   :  { %v149_v62 = vmul.f32 %v1116_v58, %v148_v60 }
 0x3fa   :  { %v150_v2 = vadd.f32 %v1116_v58, %v149_v62 }
 0x3fc   :  { %v154_v6 = vsel %vm153_vm1, %v1116_v58, %v150_v2 }
 0x3fd   :  { %v159_v7 = vsel %vm156_vm2, %v158_v3, %v154_v6 }
 0x3fe   :  { %v160_v9 = vmul.f32 %v159_v7, %v104_v4 }
 0x400   :  { %v165_v10 = vadd.f32 %v1361_v51, %v160_v9 }
 0x402   :  { %1038 = vmatmul.msk.f32.gmra.mxu0 %vm65_vm0, %v165_v10 }
 0x419   :  { %v1427_v11 = vpop.f32.mrf.mxu1 }
 0x421   :  { %v370_v12 = vpop.f32.mrf.mxu1 }
 0x422   :  { %v373_v13 = vmul.f32 0.35355338, %v370_v12 }
 0x424   :  { %v374_v14 = vsel %vm1392_vm11, -1e+09, %v373_v13 }
 0x425   :  { %v375_v15 = vsel %vm207_vm9, %v374_v14, -inf }
 0x426   :  { %376 = vmax.xlane.f32.xlu0 %v375_v15 }
 0x43a   :  { %388 = vrot.lane.b32.xlu0 %v1371_v57, %s1242_s19 }
 0x47f   :  { %v200_v16 = vpop.f32.mrf.mxu0 }
 0x480   :  { %v1435_v17 = vadd.f32 %v1368_v55, %v200_v16  ;;  %v342_v55 = vpop.f32.mrf.mxu2 }
 0x482   :  { %574 = vrot.lane.b32.xlu0 %v1435_v17, %s1232_s26  ;;  %576 = vrot.lane.b32.xlu2 %v1435_v17, %s1233_s3 }
 0x483   :  { %503 = vrot.lane.b32.xlu1 %v1435_v17, %s1234_s27 }
 0x488   :  { %v439_v21 = vpop.f32.mrf.mxu2 }
 0x489   :  { %v442_v22 = vmul.f32 0.35355338, %v439_v21 }
 0x48a   :  { %643 = vrot.lane.b32.xlu0 %v1435_v17, %s1236_s5  ;;  %714 = vrot.lane.b32.xlu2 %v1435_v17, %s1241_s18  ;;  %s1019_s18 = sshll.u32 %s1638_s13, 4  ;;  %s1020_s18 = int_to_ptr.hbm [resolvable:$true] %s1019_s18 }
 0x48b   :  { %645 = vrot.lane.b32.xlu1 %v1435_v17, %s1238_s15  ;;  %v443_v25 = vsel %vm1392_vm11, -1e+09, %v442_v22  ;;  %s1017_s15 = sshll.u32 %s1246_s0, 4  ;;  %s1018_s15 = int_to_ptr.vmem [resolvable:$true] %s1017_s15 }
 0x48c   :  { %v444_v27 = vsel %vm207_vm9, %v443_v25, -inf }
 0x499   :  { %v377_v18 = vpop.xlane.xlu0 %376 }
 0x49a   :  { %v378_v19 = vsub.f32 %v374_v14, %v377_v18 }
 0x49c   :  { %v379_v20 = vmul.f32 1.442695, %v378_v19 }
 0x49e   :  { %1117 = vpow2.f32 %v379_v20 }
 0x4a4   :  { %v1118_v26 = vpop.eup %1117 }
 0x4a5   :  { %v381_v28 = vsel %vm207_vm9, %v1118_v26, 0.0 }
 0x4ac   :  { %v389_v23 = vpop.permute.xlu0 %388 }
 0x4ad   :  { %409 = vmatpush.msrb.mxu3 %v389_v23 }
 0x4b3   :  { %445 = vmax.xlane.f32.xlu2 %v444_v27 }
 0x4b5   :  { %382 = vadd.xlane.f32.xlu1 %v381_v28 }
 0x4ce   :  { %712 = vrot.lane.b32.xlu1 %v1435_v17, %s1240_s17 }
 0x4dc   :  { %v577_v29 = vpop.permute.xlu2 %576 }
 0x4dd   :  { %1055 = vmatpush.xpose.msk.msra.mxu2 %vm207_vm9, %v577_v29 }
 0x4e4   :  { %v715_v30 = vpop.permute.xlu2 %714 }
 0x4e5   :  { %1061 = vmatpush.xpose.msk.msrb.mxu2 %vm207_vm9, %v715_v30 }
 0x4f4   :  { %v575_v32 = vpop.permute.xlu0 %574 }
 0x4f5   :  { %v504_v33 = vpop.permute.xlu1 %503  ;;  %1056 = vmatmul.msk.f32.vlgmr.msra.gmra.mxu2 %vm207_vm9, %v575_v32 }
 0x4f6   :  { %1052 = vmatpush.xpose.msk.msra.mxu3 %vm207_vm9, %v504_v33 }
 0x4fc   :  { %v644_v38 = vpop.permute.xlu0 %643 }
 0x4fd   :  { %v646_v5 = vpop.permute.xlu1 %645 }
 0x526   :  { %v446_v40 = vpop.xlane.xlu2 %445 }
 0x527   :  { %v447_v42 = vsub.f32 %v443_v25, %v446_v40  ;;  %v799_v40 = vld [vmem:[%s1631_s6 + $0x18] sm:$0xff] }
 0x528   :  { %v383_v34 = vpop.xlane.xlu1 %382 }
 0x529   :  { %1119 = vrcp.f32 %v383_v34  ;;  %v448_v45 = vmul.f32 1.442695, %v447_v42  ;;  %v797_v42 = vld [vmem:[%s1631_s6 + $0x8] sm:$0xff] }
 0x52b   :  { %1121 = vpow2.f32 %v448_v45 }
 0x52f   :  { %v1120_v35 = vpop.eup %1119 }
 0x530   :  { %v385_v36 = vmul.f32 %v1120_v35, %v1118_v26 }
 0x531   :  { %v1122_v52 = vpop.eup %1121 }
 0x532   :  { %387 = vst.msk [vmem:[#allocation6 + $0x10] sm:$0xff] %vm207_vm9, %v385_v36  ;;  %1047 = vmatmul.msk.f32.vlgmr.msrb.gmra.mxu3 %vm207_vm9, %v385_v36  ;;  %v450_v53 = vsel %vm207_vm9, %v1122_v52, 0.0 }
 0x533   :  { %1058 = vmatpush.xpose.msk.msrb.mxu3 %vm207_vm9, %v646_v5 }
 0x53a   :  { %1053 = vmatmul.msk.f32.vlgmr.msra.gmra.mxu3 %vm207_vm9, %v1435_v17 }
 0x53b   :  { %822 = vmatpush.msra.mxu3 %v799_v40 }
 0x53d   :  { %823 = vmatpush.msra.mxu3 %v798_v41 }
 0x53f   :  { %824 = vmatpush.msra.mxu3 %v797_v42 }
 0x540   :  { %v713_v37 = vpop.permute.xlu1 %712 }
 0x541   :  { %1062 = vmatmul.msk.f32.vlgmr.msrb.gmra.mxu2 %vm207_vm9, %v713_v37 }
 0x542   :  { %1059 = vmatmul.msk.f32.vlgmr.msrb.gmra.mxu3 %vm207_vm9, %v644_v38 }
 0x578   :  { %v599_v46 = vpop.f32.mrf.mxu2 }
 0x579   :  { %v602_v48 = vmul.f32 0.35355338, %v599_v46 }
 0x57b   :  { %v603_v49 = vsel %vm1470_vm4, -1e+09, %v602_v48 }
 0x57c   :  { %v604_v50 = vsel %vm207_vm9, %v603_v49, -inf }
 0x57d   :  { %605 = vmax.xlane.f32.xlu1 %v604_v50 }
 0x585   :  { %451 = vadd.xlane.f32.xlu1 %v450_v53 }
 0x59e   :  { %457 = vrot.lane.b32.xlu1 %v1371_v57, %s1243_s1 }
 0x5a6   :  { %686 = vrot.lane.b32.xlu1 %v1435_v17, %s1242_s19 }
 0x5ae   :  { %484 = vrot.lane.b32.xlu1 %v342_v55, %s1229_s14 }
 0x5b5   :  { %v411_v1 = vpop.f32.mrf.mxu3 }
 0x5bd   :  { %v526_v54 = vpop.f32.mrf.mxu3 }
 0x5be   :  { %v529_v56 = vmul.f32 0.35355338, %v526_v54 }
 0x5c0   :  { %v534_v58 = vsel %vm1470_vm4, -1e+09, %v529_v56 }
 0x5c1   :  { %v535_v59 = vsel %vm207_vm9, %v534_v58, -inf }
 0x5c2   :  { %536 = vmax.xlane.f32.xlu0 %v535_v59 }
 0x5c4   :  { %v737_v60 = vpop.f32.mrf.mxu2 }
 0x5c5   :  { %v740_v61 = vmul.f32 0.35355338, %v737_v60  ;;  %v668_v55 = vpop.f32.mrf.mxu3 }
 0x5c6   :  { %v671_v21 = vmul.f32 0.35355338, %v668_v55 }
 0x5c7   :  { %v741_v62 = vsel %vm1470_vm4, -1e+09, %v740_v61 }
 0x5c8   :  { %v742_v57 = vsel %vm207_vm9, %v741_v62, -inf  ;;  %v672_v23 = vsel %vm1470_vm4, -1e+09, %v671_v21 }
 0x5c9   :  { %v673_v25 = vsel %vm207_vm9, %v672_v23, -inf }
 0x5ca   :  { %743 = vmax.xlane.f32.xlu0 %v742_v57 }
 0x5f0   :  { %v606_v63 = vpop.xlane.xlu1 %605 }
 0x5f1   :  { %v607_v2 = vsub.f32 %v603_v49, %v606_v63  ;;  %v796_v49 = vld [vmem:[%s1631_s6] sm:$0xff] }
 0x5f2   :  { %825 = vmatpush.msra.mxu3 %v796_v49 }
 0x5f3   :  { %v608_v3 = vmul.f32 1.442695, %v607_v2  ;;  %v1094_v2 = vld [vmem:[%s1632_s7] ss:$0 sm:$0xff] }
 0x5f5   :  { %1123 = vpow2.f32 %v608_v3 }
 0x5f8   :  { %v452_v4 = vpop.xlane.xlu1 %451 }
 0x5f9   :  { %1125 = vrcp.f32 %v452_v4 }
 0x5fb   :  { %v1124_v6 = vpop.eup %1123 }
 0x5fc   :  { %v610_v7 = vsel %vm207_vm9, %v1124_v6, 0.0 }
 0x5fd   :  { %611 = vadd.xlane.f32.xlu0 %v610_v7 }
 0x5ff   :  { %v1126_v9 = vpop.eup %1125 }
 0x600   :  { %v454_v10 = vmul.f32 %v1126_v9, %v1122_v52 }
 0x602   :  { %456 = vst.msk [vmem:[#allocation6 + $0x18] sm:$0xff] %vm207_vm9, %v454_v10 }
 0x610   :  { %v458_v12 = vpop.permute.xlu1 %457 }
 0x611   :  { %548 = vrot.lane.b32.xlu0 %v1435_v17, %s1235_s28  ;;  %478 = vmatpush.msrb.mxu1 %v458_v12 }
 0x612   :  { %1050 = vmatmul.msk.f32.vlgmr.msrb.gmra.mxu1 %vm207_vm9, %v454_v10 }
 0x618   :  { %v687_v33 = vpop.permute.xlu1 %686 }
 0x619   :  { %755 = vrot.lane.b32.xlu0 %v1435_v17, %s1243_s1 }
 0x620   :  { %v485_v52 = vpop.permute.xlu1 %484 }
 0x621   :  { %488 = vrot.lane.b32.xlu0 %v411_v1, %s1244_s4  ;;  %v495_v1 = vsel %vm207_vm9, %v1427_v11, %v485_v52 }
 0x635   :  { %v537_v13 = vpop.xlane.xlu0 %536 }
 0x636   :  { %v538_v19 = vsub.f32 %v534_v58, %v537_v13 }
 0x638   :  { %v539_v22 = vmul.f32 1.442695, %v538_v19 }
 0x63d   :  { %v744_v14 = vpop.xlane.xlu0 %743 }
 0x63e   :  { %v745_v15 = vsub.f32 %v741_v62, %v744_v14 }
 0x640   :  { %v746_v16 = vmul.f32 1.442695, %v745_v15 }
 0x642   :  { %1127 = vpow2.f32 %v746_v16 }
 0x643   :  { %1129 = vpow2.f32 %v539_v22 }
 0x648   :  { %v1128_v18 = vpop.eup %1127 }
 0x649   :  { %v748_v20 = vsel %vm207_vm9, %v1128_v18, 0.0  ;;  %v1130_v26 = vpop.eup %1129 }
 0x64a   :  { %749 = vadd.xlane.f32.xlu2 %v748_v20  ;;  %v541_v27 = vsel %vm207_vm9, %v1130_v26, 0.0 }
 0x652   :  { %674 = vmax.xlane.f32.xlu2 %v673_v25  ;;  %v918_v25 = vld [vmem:[%s1633_s8 + $0x18] sm:$0xff] }
 0x65a   :  { %542 = vadd.xlane.f32.xlu2 %v541_v27  ;;  %v916_v27 = vld [vmem:[%s1633_s8 + $0x8] sm:$0xff] }
 0x670   :  { %v612_v28 = vpop.xlane.xlu0 %611 }
 0x671   :  { %1131 = vrcp.f32 %v612_v28 }
 0x677   :  { %v1132_v29 = vpop.eup %1131 }
 0x678   :  { %v614_v30 = vmul.f32 %v1132_v29, %v1124_v6 }
 0x67a   :  { %616 = vst.msk [vmem:[#allocation6 + $0x28] sm:$0xff] %vm207_vm9, %v614_v30 }
 0x683   :  { %v549_v32 = vpop.permute.xlu0 %548 }
 0x684   :  { %569 = vmatpush.msrb.mxu0 %v549_v32 }
 0x686   :  { %707 = vmatpush.msra.mxu0 %v687_v33 }
 0x68b   :  { %v756_v50 = vpop.permute.xlu0 %755 }
 0x68f   :  { %v480_v5 = vpop.f32.mrf.mxu1 }
 0x690   :  { %492 = vrot.lane.b32.xlu1 %v480_v5, %s1245_s22 }
 0x693   :  { %v489_v53 = vpop.permute.xlu0 %488 }
 0x694   :  { %v497_v54 = vsel %vm496_vm5, %v495_v1, %v489_v53 }
 0x6bd   :  { %v750_v34 = vpop.xlane.xlu2 %749 }
 0x6be   :  { %1133 = vrcp.f32 %v750_v34 }
 0x6c4   :  { %v1134_v35 = vpop.eup %1133 }
 0x6c5   :  { %v752_v36 = vmul.f32 %v1134_v35, %v1128_v18  ;;  %v675_v37 = vpop.xlane.xlu2 %674 }
 0x6c6   :  { %v676_v38 = vsub.f32 %v672_v23, %v675_v37 }
 0x6c7   :  { %754 = vst.msk [vmem:[#allocation6 + $0x38] sm:$0xff] %vm207_vm9, %v752_v36 }
 0x6c8   :  { %v677_v39 = vmul.f32 1.442695, %v676_v38 }
 0x6ca   :  { %1135 = vpow2.f32 %v677_v39 }
 0x6cd   :  { %v543_v43 = vpop.xlane.xlu2 %542 }
 0x6ce   :  { %1137 = vrcp.f32 %v543_v43 }
 0x6d0   :  { %v1136_v45 = vpop.eup %1135 }
 0x6d1   :  { %v679_v46 = vsel %vm207_vm9, %v1136_v45, 0.0 }
 0x6d2   :  { %680 = vadd.xlane.f32.xlu2 %v679_v46 }
 0x6d4   :  { %v1138_v47 = vpop.eup %1137 }
 0x6d5   :  { %v545_v48 = vmul.f32 %v1138_v47, %v1130_v26  ;;  %v917_v26 = vld [vmem:[%s1633_s8 + $0x10] sm:$0xff] }
 0x6d7   :  { %547 = vst.msk [vmem:[#allocation6 + $0x20] sm:$0xff] %vm207_vm9, %v545_v48  ;;  %1054 = vmatmul.msk.f32.vlgmr.msrb.gmra.mxu0 %vm207_vm9, %v545_v48 }
 0x6d8   :  { %941 = vmatpush.msrb.mxu0 %v918_v25 }
 0x6da   :  { %942 = vmatpush.msrb.mxu0 %v917_v26 }
 0x6dc   :  { %943 = vmatpush.msrb.mxu0 %v916_v27 }
 0x6ea   :  { %617 = vrot.lane.b32.xlu2 %v1435_v17, %s1239_s16 }
 0x702   :  { %v493_v56 = vpop.permute.xlu1 %492 }
 0x703   :  { %v499_v58 = vsel %vm498_vm6, %v497_v54, %v493_v56  ;;  %v961_v56 = vld [vmem:[%s1635_s10 + $0x38] sm:$0xff] }
 0x704   :  { %1064 = vmatmul.msk.f32.vlgmr.msra.gmra.mxu3 %vm65_vm0, %v499_v58  ;;  %v960_v58 = vld [vmem:[%s1635_s10 + $0x30] sm:$0xff]  ;;  %981 = vmatpush.msra.mxu2 %v961_v56 }
 0x706   :  { %982 = vmatpush.msra.mxu2 %v960_v58 }
 0x745   :  { %v681_v59 = vpop.xlane.xlu2 %680 }
 0x746   :  { %1139 = vrcp.f32 %v681_v59  ;;  %v959_v59 = vld [vmem:[%s1635_s10 + $0x28] sm:$0xff] }
 0x747   :  { %983 = vmatpush.msra.mxu2 %v959_v59 }
 0x74c   :  { %v1140_v60 = vpop.eup %1139 }
 0x74d   :  { %v683_v61 = vmul.f32 %v1140_v60, %v1136_v45  ;;  %v618_v17 = vpop.permute.xlu2 %617  ;;  %v958_v60 = vld [vmem:[%s1635_s10 + $0x20] sm:$0xff] }
 0x74e   :  { %638 = vmatpush.msra.mxu1 %v618_v17  ;;  %984 = vmatpush.msra.mxu2 %v958_v60 }
 0x74f   :  { %685 = vst.msk [vmem:[#allocation6 + $0x30] sm:$0xff] %vm207_vm9, %v683_v61  ;;  %1057 = vmatmul.msk.f32.vlgmr.msra.gmra.mxu1 %vm207_vm9, %v614_v30  ;;  %1060 = vmatmul.msk.f32.vlgmr.msra.gmra.mxu0 %vm207_vm9, %v683_v61  ;;  %v957_v61 = vld [vmem:[%s1635_s10 + $0x18] sm:$0xff] }
 0x750   :  { %776 = vmatpush.msrb.mxu1 %v756_v50  ;;  %985 = vmatpush.msra.mxu2 %v957_v61  ;;  %1025 = dma.vmem_to_hbm [thread:$0]  %s1018_s15, 1024, %s1020_s18, [#allocation7], %s1228_s30, %s1228_s30, %s1229_s14  }
 0x754   :  { %v571_v11 = vpop.f32.mrf.mxu0 }
 0x757   :  { %1063 = vmatmul.msk.f32.vlgmr.msrb.gmra.mxu1 %vm207_vm9, %v752_v36 }
 0x787   :  { %v827_v3 = vpop.f32.mrf.mxu3 }
 0x788   :  { %v828_v4 = vadd.f32 %v1094_v2, %v827_v3  ;;  %v955_v3 = vld [vmem:[%s1635_s10 + $0x8] sm:$0xff] }
 0x78a   :  { %v1538_v6 = vadd.f32 %v828_v4, %v1324_v0  ;;  %v1095_v4 = vld [vmem:[%s1634_s9] ss:$0 sm:$0xff] }
 0x78c   :  { %v835_v7 = vsel %vm65_vm0, %v1538_v6, 0.0 }
 0x7cc   :  { %v640_v62 = vpop.f32.mrf.mxu1  ;;  %v709_v57 = vpop.f32.mrf.mxu0 }
 0x7cd   :  { %782 = vrot.lane.b32.xlu0 %v640_v62, %s1229_s14  ;;  %786 = vrot.lane.b32.xlu2 %v709_v57, %s1244_s4 }
 0x7d4   :  { %v778_v63 = vpop.f32.mrf.mxu1 }
 0x7d5   :  { %790 = vrot.lane.b32.xlu1 %v778_v63, %s1245_s22 }
 0x7f7   :  { %836 = vadd.xlane.f32.xlu0 %v835_v7 }
 0x827   :  { %v787_v12 = vpop.permute.xlu2 %786 }
 0x83f   :  { %v783_v9 = vpop.permute.xlu0 %782 }
 0x840   :  { %v793_v10 = vsel %vm207_vm9, %v571_v11, %v783_v9 }
 0x841   :  { %v794_v14 = vsel %vm496_vm5, %v793_v10, %v787_v12 }
 0x847   :  { %v791_v13 = vpop.permute.xlu1 %790 }
 0x848   :  { %v795_v15 = vsel %vm498_vm6, %v794_v14, %v791_v13 }
 0x849   :  { %1065 = vmatmul.msk.f32.gmra.mxu3 %vm65_vm0, %v795_v15 }
 0x86a   :  { %v837_v16 = vpop.xlane.xlu0 %836 }
 0x86b   :  { %v841_v55 = vmul.f32 %v837_v16, %v1328_v8 }
 0x86d   :  { %v843_v0 = vsub.f32 %v1538_v6, %v841_v55 }
 0x86f   :  { %v845_v18 = vmul.f32 %v843_v0, %v843_v0  ;;  %v855_v50 = vmul.f32 %v1355_v44, %v843_v0 }
 0x871   :  { %v847_v19 = vsel %vm65_vm0, %v845_v18, 0.0 }
 0x872   :  { %848 = vadd.xlane.f32.xlu1 %v847_v19 }
 0x8cc   :  { %v830_v20 = vpop.f32.mrf.mxu3 }
 0x8cd   :  { %v831_v21 = vadd.f32 %v1094_v2, %v830_v20  ;;  %v956_v2 = vld [vmem:[%s1635_s10 + $0x10] sm:$0xff] }
 0x8ce   :  { %986 = vmatpush.msra.mxu2 %v956_v2 }
 0x8cf   :  { %v1550_v22 = vadd.f32 %v831_v21, %v1348_v31  ;;  %v915_v31 = vld [vmem:[%s1633_s8] sm:$0xff] }
 0x8d0   :  { %944 = vmatpush.msrb.mxu0 %v915_v31  ;;  %987 = vmatpush.msra.mxu2 %v955_v3 }
 0x8d1   :  { %v838_v23 = vsel %vm65_vm0, %v1550_v22, 0.0 }
 0x8d2   :  { %839 = vadd.xlane.f32.xlu2 %v838_v23 }
 0x8e5   :  { %v849_v28 = vpop.xlane.xlu1 %848 }
 0x8e6   :  { %v853_v29 = vmul.f32 %v849_v28, %v1345_v24 }
 0x8e8   :  { %1141 = vrsqrt.f32 %v853_v29  ;;  %vm864_vm7 = vcmp.eq.f32.partialorder %v853_v29, inf  ;;  %v867_v37 = vand.u32 2147483648, %v853_v29  ;;  %vm866_vm8 = vcmp.eq.f32.partialorder %v853_v29, 0.0 }
 0x8ee   :  { %v1142_v30 = vpop.eup %1141 }
 0x8ef   :  { %v858_v32 = vmul.f32 %v1142_v30, %v853_v29 }
 0x8f1   :  { %v859_v33 = vmul.f32 %v1142_v30, %v858_v32 }
 0x8f3   :  { %v860_v5 = vmul.f32 0.5, %v859_v33 }
 0x8f5   :  { %v861_v34 = vsub.f32 1.5, %v860_v5 }
 0x8f7   :  { %v862_v35 = vmul.f32 %v1142_v30, %v861_v34 }
 0x8f9   :  { %v863_v36 = vmul.f32 %v862_v35, %v853_v29 }
 0x8fb   :  { %v865_v38 = vsel %vm864_vm7, %v853_v29, %v863_v36 }
 0x8fc   :  { %v868_v39 = vsel %vm866_vm8, %v867_v37, %v865_v38  ;;  %v1096_v37 = vld [vmem:[%s1636_s11] ss:$0 sm:$0xff]  ;;  %s1247_s11 = smov [#allocation5]  }
 0x8fd   :  { %v881_v40 = vadd.f32 1e-06, %v868_v39  ;;  %s1004_s19 = sshll.u32 %s1247_s11, 4  ;;  %s1005_s19 = int_to_ptr.vmem [resolvable:$true] %s1004_s19 }
 0x8ff   :  { %1143 = vrcp.f32 %v881_v40  ;;  %v894_v45 = vand.u32 2147483648, %v881_v40  ;;  %v892_v47 = vand.u32 2147483647, %v881_v40  ;;  %vm888_vm10 = vweird.f32 %v881_v40 }
 0x901   :  { %v895_v49 = vor.u32 1.1754944e-38, %v894_v45  ;;  %vm893_vm12 = vcmp.eq.f32.partialorder %v892_v47, 8.507059e+37 }
 0x905   :  { %v1144_v41 = vpop.eup %1143 }
 0x906   :  { %v884_v42 = vmul.f32 %v1144_v41, %v881_v40  ;;  %vm889_vm9 = vweird.f32 %v1144_v41 }
 0x907   :  { %vm890_vm11 = vmor %vm888_vm10, %vm889_vm9 }
 0x908   :  { %v885_v43 = vsub.f32 1.0, %v884_v42 }
 0x90a   :  { %v886_v46 = vmul.f32 %v1144_v41, %v885_v43 }
 0x90c   :  { %v887_v48 = vadd.f32 %v1144_v41, %v886_v46 }
 0x90e   :  { %v891_v52 = vsel %vm890_vm11, %v1144_v41, %v887_v48 }
 0x90f   :  { %v896_v53 = vsel %vm893_vm12, %v895_v49, %v891_v52 }
 0x910   :  { %v897_v1 = vmul.f32 %v896_v53, %v855_v50 }
 0x912   :  { %v913_v54 = vadd.f32 %v1361_v51, %v897_v1 }
 0x914   :  { %1066 = vmatmul.msk.f32.vlgmr.msrb.gmra.mxu0 %vm65_vm0, %v913_v54 }
 0x945   :  { %v840_v17 = vpop.xlane.xlu2 %839 }
 0x946   :  { %v842_v11 = vmul.f32 %v840_v17, %v1328_v8  ;;  %v954_v8 = vld [vmem:[%s1635_s10] sm:$0xff] }
 0x947   :  { %988 = vmatpush.msra.mxu2 %v954_v8 }
 0x948   :  { %v844_v62 = vsub.f32 %v1550_v22, %v842_v11 }
 0x94a   :  { %v846_v57 = vmul.f32 %v844_v62, %v844_v62  ;;  %v856_v33 = vmul.f32 %v1355_v44, %v844_v62 }
 0x94c   :  { %v850_v63 = vsel %vm65_vm0, %v846_v57, 0.0 }
 0x94d   :  { %851 = vadd.xlane.f32.xlu0 %v850_v63 }
 0x991   :  { %v946_v7 = vpop.f32.mrf.mxu0 }
 0x992   :  { %v947_v9 = vadd.f32 %v1095_v4, %v946_v7 }
 0x994   :  { %v952_v10 = vmax.f32 %v947_v9, 0.0 }
 0x996   :  { %1068 = vmatmul.msk.f32.vlgmr.msra.gmra.mxu2 %vm966_vm13, %v952_v10 }
 0x9c0   :  { %v852_v12 = vpop.xlane.xlu0 %851 }
 0x9c1   :  { %v854_v13 = vmul.f32 %v852_v12, %v1345_v24 }
 0x9c3   :  { %1145 = vrsqrt.f32 %v854_v13  ;;  %vm876_vm14 = vcmp.eq.f32.partialorder %v854_v13, inf  ;;  %v879_v20 = vand.u32 2147483648, %v854_v13  ;;  %vm878_vm15 = vcmp.eq.f32.partialorder %v854_v13, 0.0 }
 0x9c9   :  { %v1146_v14 = vpop.eup %1145 }
 0x9ca   :  { %v870_v15 = vmul.f32 %v1146_v14, %v854_v13 }
 0x9cc   :  { %v871_v16 = vmul.f32 %v1146_v14, %v870_v15 }
 0x9ce   :  { %v872_v55 = vmul.f32 0.5, %v871_v16 }
 0x9d0   :  { %v873_v0 = vsub.f32 1.5, %v872_v55 }
 0x9d2   :  { %v874_v18 = vmul.f32 %v1146_v14, %v873_v0 }
 0x9d4   :  { %v875_v19 = vmul.f32 %v874_v18, %v854_v13 }
 0x9d6   :  { %v877_v21 = vsel %vm876_vm14, %v854_v13, %v875_v19 }
 0x9d7   :  { %v880_v23 = vsel %vm878_vm15, %v879_v20, %v877_v21 }
 0x9d8   :  { %v882_v25 = vadd.f32 1e-06, %v880_v23 }
 0x9da   :  { %1147 = vrcp.f32 %v882_v25  ;;  %v909_v28 = vand.u32 2147483648, %v882_v25  ;;  %v907_v29 = vand.u32 2147483647, %v882_v25  ;;  %vm903_vm2 = vweird.f32 %v882_v25 }
 0x9dc   :  { %v910_v32 = vor.u32 1.1754944e-38, %v909_v28  ;;  %vm908_vm4 = vcmp.eq.f32.partialorder %v907_v29, 8.507059e+37 }
 0x9e0   :  { %v1148_v26 = vpop.eup %1147 }
 0x9e1   :  { %v899_v27 = vmul.f32 %v1148_v26, %v882_v25  ;;  %vm904_vm1 = vweird.f32 %v1148_v26 }
 0x9e2   :  { %vm905_vm3 = vmor %vm903_vm2, %vm904_vm1 }
 0x9e3   :  { %v900_v31 = vsub.f32 1.0, %v899_v27 }
 0x9e5   :  { %v901_v24 = vmul.f32 %v1148_v26, %v900_v31 }
 0x9e7   :  { %v902_v30 = vadd.f32 %v1148_v26, %v901_v24 }
 0x9e9   :  { %v906_v5 = vsel %vm905_vm3, %v1148_v26, %v902_v30 }
 0x9ea   :  { %v911_v34 = vsel %vm908_vm4, %v910_v32, %v906_v5 }
 0x9eb   :  { %v912_v35 = vmul.f32 %v911_v34, %v856_v33 }
 0x9ed   :  { %v914_v36 = vadd.f32 %v1361_v51, %v912_v35 }
 0x9ef   :  { %1067 = vmatmul.msk.f32.gmra.mxu0 %vm65_vm0, %v914_v36 }
 0xa19   :  { %v990_v38 = vpop.f32.mrf.mxu2 }
 0xa1a   :  { %v991_v39 = vadd.f32 %v1096_v37, %v990_v38 }
 0xa1c   :  { %v996_v40 = vadd.f32 %v991_v39, %v1538_v6 }
 0xa1e   :  { %998 = vst.msk [vmem:[#allocation5] sm:$0xff] %vm65_vm0, %v996_v40 }
 0xa6c   :  { %v949_v41 = vpop.f32.mrf.mxu0 }
 0xa6d   :  { %v950_v44 = vadd.f32 %v1095_v4, %v949_v41 }
 0xa6f   :  { %v953_v42 = vmax.f32 %v950_v44, 0.0 }
 0xa71   :  { %1069 = vmatmul.msk.f32.gmra.mxu2 %vm966_vm13, %v953_v42 }
 0xaf4   :  { %v993_v51 = vpop.f32.mrf.mxu2 }
 0xaf5   :  { %v994_v6 = vadd.f32 %v1096_v37, %v993_v51 }
 0xaf7   :  { %v997_v43 = vadd.f32 %v994_v6, %v1550_v22 }
 0xaf9   :  { %999 = vst.msk [vmem:[#allocation5 + $0x8] sm:$0xff] %vm65_vm0, %v997_v43 }
 0xafa   :  { %1012 = dma.vmem_to_hbm [thread:$0]  %s1005_s19, 256, %s1007_s21, [#allocation4], %s1228_s30, %s1228_s30, %s1229_s14  }
 0xafb   :  { %1223 = dma.done.wait [#allocation4], 256  }
 0xafc   :  { %1224 = vsyncadd [#allocation4], 4294967040 }
 0xafd   :  { %1225 = dma.done.wait [#allocation7], 1024  }
 0xafe   :  { %1226 = vsyncadd [#allocation7], 4294966272 }
 0xaff   :  { %1034 = vsyncpa [#allocation3], 1 }
 0xb00   :  { %1035 = vsyncpa [#allocation4], 1 }
 0xb01   :  { %1036 = vsyncpa [#allocation7], 1 }

</bundles_post_ra>
